<compile_context>
chip_gen: v7x
topology: tpu7x:2x2x1
jax: 0.10.0
libtpu: 0.0.40
codegen_flags: <defaults>
</compile_context>

<pallas_src>
import functools

import jax
import jax.numpy as jnp
from jax.experimental import pallas as pl
from jax.experimental.pallas import tpu as pltpu


# ----------------------------------------------------------------------------
# In-kernel helpers
# ----------------------------------------------------------------------------
def _reflect_pad1(a):
    """Reflect-pad (H, W, C) by 1 on H and W (PyTorch ReflectionPad2d(1))."""
    H, W = a.shape[0], a.shape[1]
    a = jnp.concatenate([a[1:2], a, a[H - 2:H - 1]], axis=0)          # (H+2, W,   C)
    a = jnp.concatenate([a[:, 1:2], a, a[:, W - 2:W - 1]], axis=1)    # (H+2, W+2, C)
    return a


def _conv3x3_elu(ap, w_ref, bias, *, channels_first_out):
    """3x3 stride-1 conv + bias + ELU on a reflect-padded bf16 tile.

    ap:    (H+2, W+2, C) bf16  padded activation
    w_ref: (9, C, Cout) bf16 ref if channels_last out,
           (9, Cout, C) bf16 ref if channels_first out   (tap index = dy*3 + dx)
    bias:  (1, Cout) f32 (channels-last) or (Cout, 1) f32 (channels-first)
    returns (H*W, Cout) f32  or  (Cout, H*W) f32
    """
    Hp, Wp, C = ap.shape
    H, W = Hp - 2, Wp - 2

    # 9 per-tap matmuls, K = C: no im2col materialization, no lane concats.
    acc = None
    for dy in range(3):
        for dx in range(3):
            tap = ap[dy:dy + H, dx:dx + W, :].reshape(H * W, C)   # bf16
            w_t = w_ref[dy * 3 + dx]
            if channels_first_out:
                # (Cout, C) x (H*W, C)ᵀ -> (Cout, H*W): result is already
                # channels-first, so the store needs no XLU transpose.
                part = jax.lax.dot_general(
                    w_t, tap, (((1,), (1,)), ((), ())),
                    preferred_element_type=jnp.float32)
            else:
                part = jnp.dot(tap, w_t, preferred_element_type=jnp.float32)
            acc = part if acc is None else acc + part

    acc = acc + bias                                              # f32 epilogue
    # ELU (alpha=1). exp is guarded with min(x, 0) so unselected lanes never
    # overflow; equals jax.nn.elu up to f32 rounding for this forward pass.
    return jnp.where(acc > 0.0, acc, jnp.exp(jnp.minimum(acc, 0.0)) - 1.0)


# ----------------------------------------------------------------------------
# Fused Pallas kernel: reflect-pad + conv1 + ELU + reflect-pad + conv2 + ELU
# ----------------------------------------------------------------------------
def _block_kernel(x_ref, w1_ref, b1_ref, w2_ref, b2_ref, o_ref):
    # x_ref : (1, H, W, Cin)   bf16  (NHWC, one batch element)
    # w1_ref: (9, Cin, Cmid)   bf16
    # b1_ref: (1, Cmid)        f32
    # w2_ref: (9, Cout, Cmid)  bf16  (per-tap pre-transposed)
    # b2_ref: (Cout, 1)        f32
    # o_ref : (1, Cout, H*W)   f32   channels-first, lane-dense spatial
    H, W = x_ref.shape[1], x_ref.shape[2]

    x = x_ref[0]                                                       # (H, W, Cin) bf16

    y1 = _conv3x3_elu(_reflect_pad1(x), w1_ref, b1_ref[...],
                      channels_first_out=False)                        # (H*W, Cmid) f32
    y1 = y1.reshape(H, W, -1).astype(jnp.bfloat16)                     # (H, W, Cmid) bf16

    y2 = _conv3x3_elu(_reflect_pad1(y1), w2_ref, b2_ref[...],
                      channels_first_out=True)                         # (Cout, H*W) f32

    o_ref[0] = y2


# ----------------------------------------------------------------------------
# Wrapper
# ----------------------------------------------------------------------------
def conv_upsample_block(x_nchw, params, *, upsample=True):
    """ConvUpsampleBlock forward. x_nchw: (B, Cin, H, W) f32 -> (B, Cout, OH, OW) f32."""
    w1, b1, w2, b2 = params            # w*: HWIO (3, 3, Ci, Co) f32
    B, Cin, H, W = x_nchw.shape
    Cmid = w1.shape[-1]
    Cout = w2.shape[-1]

    # Single boundary transpose to NHWC + bf16 cast (halves the per-step input DMA).
    x = jnp.transpose(x_nchw, (0, 2, 3, 1)).astype(jnp.bfloat16)

    # Per-tap weight layout (tap = dy*3 + dx); conv2 pre-transposed to (Cout, Cmid)
    # per tap so the kernel accumulates channels-first with no result transpose.
    w1t = w1.reshape(9, Cin, Cmid).astype(jnp.bfloat16)
    w2t = jnp.transpose(w2.reshape(9, Cmid, Cout), (0, 2, 1)).astype(jnp.bfloat16)
    b1m = b1.reshape(1, Cmid).astype(jnp.float32)
    b2m = b2.reshape(Cout, 1).astype(jnp.float32)

    # VMEM limit sized from actual per-step buffers (never below the 32 MiB default,
    # capped under v7x's 64 MiB physical VMEM).
    per_step = (
        2 * H * W * Cin * 2                                        # x block (bf16, 2 bufs)
        + 2 * 9 * (Cin * Cmid + Cmid * Cout) * 2                   # weights (bf16, 2 bufs)
        + 2 * Cout * H * W * 4                                     # output block (f32, 2 bufs)
        + 8 * (H + 2) * (W + 2) * max(Cin, Cmid, Cout) * 4         # intermediates, generous
    )
    vmem_limit = int(min(64 * 2 ** 20, max(32 * 2 ** 20, 2 * per_step)))

    cost = pl.CostEstimate(
        flops=2 * B * H * W * 9 * (Cin * Cmid + Cmid * Cout),
        transcendentals=B * H * W * (Cmid + Cout),
        bytes_accessed=(x.size * 2 + w1t.size * 2 + w2t.size * 2
                        + b1m.size * 4 + b2m.size * 4 + B * Cout * H * W * 4),
    )

    out = pl.pallas_call(
        _block_kernel,
        out_shape=jax.ShapeDtypeStruct((B, Cout, H * W), jnp.float32),
        grid=(B,),
        in_specs=[
            pl.BlockSpec((1, H, W, Cin), lambda b: (b, 0, 0, 0)),
            pl.BlockSpec((9, Cin, Cmid), lambda b: (0, 0, 0)),
            pl.BlockSpec((1, Cmid), lambda b: (0, 0)),
            pl.BlockSpec((9, Cout, Cmid), lambda b: (0, 0, 0)),
            pl.BlockSpec((Cout, 1), lambda b: (0, 0)),
        ],
        out_specs=pl.BlockSpec((1, Cout, H * W), lambda b: (b, 0, 0)),
        compiler_params=pltpu.CompilerParams(
            dimension_semantics=("parallel",),
            vmem_limit_bytes=vmem_limit,
        ),
        cost_estimate=cost,
    )(x, w1t, b1m, w2t, b2m)

    # Row-major split of the flattened spatial dim -> free reshape, NCHW output.
    y = out.reshape(B, Cout, H, W)
    if upsample:
        # 2x nearest upsample: pure bandwidth-only repeat outside the kernel
        # (replaces the dense (H*W, 4*H*W) f32 matmul that dominated MXU time
        # and broke VMEM at real resolutions).
        y = jnp.repeat(jnp.repeat(y, 2, axis=2), 2, axis=3)
    return y


# ----------------------------------------------------------------------------
# Parameter init (deterministic, synthetic) + pure-JAX reference
# ----------------------------------------------------------------------------
def init_params(key, in_ch, out_ch):
    k1, k2, k3, k4 = jax.random.split(key, 4)
    s1 = 1.0 / jnp.sqrt(jnp.float32(in_ch * 9))
    s2 = 1.0 / jnp.sqrt(jnp.float32(out_ch * 9))
    w1 = jax.random.normal(k1, (3, 3, in_ch, out_ch), jnp.float32) * s1
    b1 = jax.random.normal(k2, (out_ch,), jnp.float32) * 0.01
    w2 = jax.random.normal(k3, (3, 3, out_ch, out_ch), jnp.float32) * s2
    b2 = jax.random.normal(k4, (out_ch,), jnp.float32) * 0.01
    return (w1, b1, w2, b2)


def conv_upsample_block_ref(x_nchw, params, *, upsample=True):
    w1, b1, w2, b2 = params
    x = jnp.transpose(x_nchw, (0, 2, 3, 1))

    def conv_block(a, w, b):
        ap = jnp.pad(a, ((0, 0), (1, 1), (1, 1), (0, 0)), mode="reflect")
        y = jax.lax.conv_general_dilated(
            ap, w, window_strides=(1, 1), padding="VALID",
            dimension_numbers=("NHWC", "HWIO", "NHWC"),
        ) + b[None, None, None, :]
        return jax.nn.elu(y)

    y = conv_block(conv_block(x, w1, b1), w2, b2)
    if upsample:
        y = jnp.repeat(jnp.repeat(y, 2, axis=1), 2, axis=2)
    return jnp.transpose(y, (0, 3, 1, 2))


# ----------------------------------------------------------------------------
# Main
# ----------------------------------------------------------------------------
if __name__ == "__main__":
    key = jax.random.PRNGKey(0)
    kp, kx = jax.random.split(key)

    B, Cin, Cout, H, W = 2, 64, 32, 16, 16
    params = init_params(kp, Cin, Cout)
    x = jax.random.normal(kx, (B, Cin, H, W), jnp.float32)

    fwd_up = jax.jit(functools.partial(conv_upsample_block, upsample=True))
    fwd_noup = jax.jit(functools.partial(conv_upsample_block, upsample=False))

    # upsample=True (module default)
    out = jax.block_until_ready(fwd_up(x, params))
    assert out.shape == (B, Cout, 2 * H, 2 * W), out.shape
    ref = jax.block_until_ready(conv_upsample_block_ref(x, params, upsample=True))
    # bf16 MXU inputs -> loosened tolerance vs the f32 reference.
    assert jnp.allclose(out, ref, atol=5e-2, rtol=5e-2), (
        float(jnp.max(jnp.abs(out - ref)))
    )

    # upsample=False branch
    out2 = jax.block_until_ready(fwd_noup(x, params))
    assert out2.shape == (B, Cout, H, W), out2.shape
    ref2 = conv_upsample_block_ref(x, params, upsample=False)
    assert jnp.allclose(out2, ref2, atol=5e-2, rtol=5e-2), (
        float(jnp.max(jnp.abs(out2 - ref2)))
    )

    print("KERNEL_OK")
</pallas_src>

<mosaic_0001>
module attributes {stable_mosaic.version = 11 : i64} {
  func.func @_block_kernel(%arg0: i32, %arg1: memref<1x16x16x64xbf16, #tpu.memory_space<vmem>>, %arg2: memref<9x64x32xbf16, #tpu.memory_space<vmem>>, %arg3: memref<1x32xf32, #tpu.memory_space<vmem>>, %arg4: memref<9x32x32xbf16, #tpu.memory_space<vmem>>, %arg5: memref<32x1xf32, #tpu.memory_space<vmem>>, %arg6: memref<1x32x256xf32, #tpu.memory_space<vmem>>) attributes {dimension_semantics = [#tpu.dimension_semantics<parallel>], iteration_bounds = array<i64: 2>, scalar_prefetch = 0 : i64, scratch_operands = 0 : i64, tpu.core_type = #tpu.core_type<tc>, window_params = [{transform_indices = @transform_0, window_bounds = array<i64: 1, 16, 16, 64>}, {pipeline_mode = #tpu.pipeline_mode<synchronous>, transform_indices = @transform_1, window_bounds = array<i64: 9, 64, 32>}, {pipeline_mode = #tpu.pipeline_mode<synchronous>, transform_indices = @transform_2, window_bounds = array<i64: 1, 32>}, {pipeline_mode = #tpu.pipeline_mode<synchronous>, transform_indices = @transform_3, window_bounds = array<i64: 9, 32, 32>}, {pipeline_mode = #tpu.pipeline_mode<synchronous>, transform_indices = @transform_4, window_bounds = array<i64: 32, 1>}, {transform_indices = @transform_5, window_bounds = array<i64: 1, 32, 256>}]} {
    %c0 = arith.constant 0 : index
    %c0_0 = arith.constant 0 : index
    %c0_1 = arith.constant 0 : index
    %c0_2 = arith.constant 0 : index
    %0 = vector.load %arg1[%c0, %c0_0, %c0_1, %c0_2] : memref<1x16x16x64xbf16, #tpu.memory_space<vmem>>, vector<1x16x16x64xbf16>
    %1 = vector.shape_cast %0 : vector<1x16x16x64xbf16> to vector<16x16x64xbf16>
    %2 = vector.extract_strided_slice %1 {offsets = [1, 0, 0], sizes = [1, 16, 64], strides = [1, 1, 1]} : vector<16x16x64xbf16> to vector<1x16x64xbf16>
    %3 = vector.extract_strided_slice %1 {offsets = [14, 0, 0], sizes = [1, 16, 64], strides = [1, 1, 1]} : vector<16x16x64xbf16> to vector<1x16x64xbf16>
    %4 = tpu.concatenate %2, %1, %3 in 0 : vector<1x16x64xbf16>, vector<16x16x64xbf16>, vector<1x16x64xbf16> -> vector<18x16x64xbf16>
    %5 = vector.extract_strided_slice %4 {offsets = [0, 1, 0], sizes = [18, 1, 64], strides = [1, 1, 1]} : vector<18x16x64xbf16> to vector<18x1x64xbf16>
    %6 = vector.extract_strided_slice %4 {offsets = [0, 14, 0], sizes = [18, 1, 64], strides = [1, 1, 1]} : vector<18x16x64xbf16> to vector<18x1x64xbf16>
    %7 = tpu.concatenate %5, %4, %6 in 1 : vector<18x1x64xbf16>, vector<18x16x64xbf16>, vector<18x1x64xbf16> -> vector<18x18x64xbf16>
    %c0_3 = arith.constant 0 : index
    %c0_4 = arith.constant 0 : index
    %8 = vector.load %arg3[%c0_3, %c0_4] : memref<1x32xf32, #tpu.memory_space<vmem>>, vector<1x32xf32>
    %9 = vector.extract_strided_slice %7 {offsets = [0, 0, 0], sizes = [16, 16, 64], strides = [1, 1, 1]} : vector<18x18x64xbf16> to vector<16x16x64xbf16>
    %10 = vector.shape_cast %9 : vector<16x16x64xbf16> to vector<256x64xbf16>
    %c0_5 = arith.constant 0 : index
    %c0_6 = arith.constant 0 : index
    %c0_7 = arith.constant 0 : index
    %11 = vector.load %arg2[%c0_5, %c0_6, %c0_7] : memref<9x64x32xbf16, #tpu.memory_space<vmem>>, vector<1x64x32xbf16>
    %12 = vector.shape_cast %11 : vector<1x64x32xbf16> to vector<64x32xbf16>
    %cst = arith.constant dense<0.000000e+00> : vector<256x32xf32>
    %13 = tpu.matmul %10, %12, %cst {dimension_numbers = #tpu.dot_dimension_numbers<[1], [0], [0], [1], [0, 0, 1, 1], [], []>} : vector<256x64xbf16>, vector<64x32xbf16>, vector<256x32xf32> -> vector<256x32xf32>
    %14 = vector.extract_strided_slice %7 {offsets = [0, 1, 0], sizes = [16, 16, 64], strides = [1, 1, 1]} : vector<18x18x64xbf16> to vector<16x16x64xbf16>
    %15 = vector.shape_cast %14 : vector<16x16x64xbf16> to vector<256x64xbf16>
    %c1 = arith.constant 1 : index
    %c0_8 = arith.constant 0 : index
    %c0_9 = arith.constant 0 : index
    %16 = vector.load %arg2[%c1, %c0_8, %c0_9] : memref<9x64x32xbf16, #tpu.memory_space<vmem>>, vector<1x64x32xbf16>
    %17 = vector.shape_cast %16 : vector<1x64x32xbf16> to vector<64x32xbf16>
    %cst_10 = arith.constant dense<0.000000e+00> : vector<256x32xf32>
    %18 = tpu.matmul %15, %17, %cst_10 {dimension_numbers = #tpu.dot_dimension_numbers<[1], [0], [0], [1], [0, 0, 1, 1], [], []>} : vector<256x64xbf16>, vector<64x32xbf16>, vector<256x32xf32> -> vector<256x32xf32>
    %19 = arith.addf %13, %18 : vector<256x32xf32>
    %20 = vector.extract_strided_slice %7 {offsets = [0, 2, 0], sizes = [16, 16, 64], strides = [1, 1, 1]} : vector<18x18x64xbf16> to vector<16x16x64xbf16>
    %21 = vector.shape_cast %20 : vector<16x16x64xbf16> to vector<256x64xbf16>
    %c2 = arith.constant 2 : index
    %c0_11 = arith.constant 0 : index
    %c0_12 = arith.constant 0 : index
    %22 = vector.load %arg2[%c2, %c0_11, %c0_12] : memref<9x64x32xbf16, #tpu.memory_space<vmem>>, vector<1x64x32xbf16>
    %23 = vector.shape_cast %22 : vector<1x64x32xbf16> to vector<64x32xbf16>
    %cst_13 = arith.constant dense<0.000000e+00> : vector<256x32xf32>
    %24 = tpu.matmul %21, %23, %cst_13 {dimension_numbers = #tpu.dot_dimension_numbers<[1], [0], [0], [1], [0, 0, 1, 1], [], []>} : vector<256x64xbf16>, vector<64x32xbf16>, vector<256x32xf32> -> vector<256x32xf32>
    %25 = arith.addf %19, %24 : vector<256x32xf32>
    %26 = vector.extract_strided_slice %7 {offsets = [1, 0, 0], sizes = [16, 16, 64], strides = [1, 1, 1]} : vector<18x18x64xbf16> to vector<16x16x64xbf16>
    %27 = vector.shape_cast %26 : vector<16x16x64xbf16> to vector<256x64xbf16>
    %c3 = arith.constant 3 : index
    %c0_14 = arith.constant 0 : index
    %c0_15 = arith.constant 0 : index
    %28 = vector.load %arg2[%c3, %c0_14, %c0_15] : memref<9x64x32xbf16, #tpu.memory_space<vmem>>, vector<1x64x32xbf16>
    %29 = vector.shape_cast %28 : vector<1x64x32xbf16> to vector<64x32xbf16>
    %cst_16 = arith.constant dense<0.000000e+00> : vector<256x32xf32>
    %30 = tpu.matmul %27, %29, %cst_16 {dimension_numbers = #tpu.dot_dimension_numbers<[1], [0], [0], [1], [0, 0, 1, 1], [], []>} : vector<256x64xbf16>, vector<64x32xbf16>, vector<256x32xf32> -> vector<256x32xf32>
    %31 = arith.addf %25, %30 : vector<256x32xf32>
    %32 = vector.extract_strided_slice %7 {offsets = [1, 1, 0], sizes = [16, 16, 64], strides = [1, 1, 1]} : vector<18x18x64xbf16> to vector<16x16x64xbf16>
    %33 = vector.shape_cast %32 : vector<16x16x64xbf16> to vector<256x64xbf16>
    %c4 = arith.constant 4 : index
    %c0_17 = arith.constant 0 : index
    %c0_18 = arith.constant 0 : index
    %34 = vector.load %arg2[%c4, %c0_17, %c0_18] : memref<9x64x32xbf16, #tpu.memory_space<vmem>>, vector<1x64x32xbf16>
    %35 = vector.shape_cast %34 : vector<1x64x32xbf16> to vector<64x32xbf16>
    %cst_19 = arith.constant dense<0.000000e+00> : vector<256x32xf32>
    %36 = tpu.matmul %33, %35, %cst_19 {dimension_numbers = #tpu.dot_dimension_numbers<[1], [0], [0], [1], [0, 0, 1, 1], [], []>} : vector<256x64xbf16>, vector<64x32xbf16>, vector<256x32xf32> -> vector<256x32xf32>
    %37 = arith.addf %31, %36 : vector<256x32xf32>
    %38 = vector.extract_strided_slice %7 {offsets = [1, 2, 0], sizes = [16, 16, 64], strides = [1, 1, 1]} : vector<18x18x64xbf16> to vector<16x16x64xbf16>
    %39 = vector.shape_cast %38 : vector<16x16x64xbf16> to vector<256x64xbf16>
    %c5 = arith.constant 5 : index
    %c0_20 = arith.constant 0 : index
    %c0_21 = arith.constant 0 : index
    %40 = vector.load %arg2[%c5, %c0_20, %c0_21] : memref<9x64x32xbf16, #tpu.memory_space<vmem>>, vector<1x64x32xbf16>
    %41 = vector.shape_cast %40 : vector<1x64x32xbf16> to vector<64x32xbf16>
    %cst_22 = arith.constant dense<0.000000e+00> : vector<256x32xf32>
    %42 = tpu.matmul %39, %41, %cst_22 {dimension_numbers = #tpu.dot_dimension_numbers<[1], [0], [0], [1], [0, 0, 1, 1], [], []>} : vector<256x64xbf16>, vector<64x32xbf16>, vector<256x32xf32> -> vector<256x32xf32>
    %43 = arith.addf %37, %42 : vector<256x32xf32>
    %44 = vector.extract_strided_slice %7 {offsets = [2, 0, 0], sizes = [16, 16, 64], strides = [1, 1, 1]} : vector<18x18x64xbf16> to vector<16x16x64xbf16>
    %45 = vector.shape_cast %44 : vector<16x16x64xbf16> to vector<256x64xbf16>
    %c6 = arith.constant 6 : index
    %c0_23 = arith.constant 0 : index
    %c0_24 = arith.constant 0 : index
    %46 = vector.load %arg2[%c6, %c0_23, %c0_24] : memref<9x64x32xbf16, #tpu.memory_space<vmem>>, vector<1x64x32xbf16>
    %47 = vector.shape_cast %46 : vector<1x64x32xbf16> to vector<64x32xbf16>
    %cst_25 = arith.constant dense<0.000000e+00> : vector<256x32xf32>
    %48 = tpu.matmul %45, %47, %cst_25 {dimension_numbers = #tpu.dot_dimension_numbers<[1], [0], [0], [1], [0, 0, 1, 1], [], []>} : vector<256x64xbf16>, vector<64x32xbf16>, vector<256x32xf32> -> vector<256x32xf32>
    %49 = arith.addf %43, %48 : vector<256x32xf32>
    %50 = vector.extract_strided_slice %7 {offsets = [2, 1, 0], sizes = [16, 16, 64], strides = [1, 1, 1]} : vector<18x18x64xbf16> to vector<16x16x64xbf16>
    %51 = vector.shape_cast %50 : vector<16x16x64xbf16> to vector<256x64xbf16>
    %c7 = arith.constant 7 : index
    %c0_26 = arith.constant 0 : index
    %c0_27 = arith.constant 0 : index
    %52 = vector.load %arg2[%c7, %c0_26, %c0_27] : memref<9x64x32xbf16, #tpu.memory_space<vmem>>, vector<1x64x32xbf16>
    %53 = vector.shape_cast %52 : vector<1x64x32xbf16> to vector<64x32xbf16>
    %cst_28 = arith.constant dense<0.000000e+00> : vector<256x32xf32>
    %54 = tpu.matmul %51, %53, %cst_28 {dimension_numbers = #tpu.dot_dimension_numbers<[1], [0], [0], [1], [0, 0, 1, 1], [], []>} : vector<256x64xbf16>, vector<64x32xbf16>, vector<256x32xf32> -> vector<256x32xf32>
    %55 = arith.addf %49, %54 : vector<256x32xf32>
    %56 = vector.extract_strided_slice %7 {offsets = [2, 2, 0], sizes = [16, 16, 64], strides = [1, 1, 1]} : vector<18x18x64xbf16> to vector<16x16x64xbf16>
    %57 = vector.shape_cast %56 : vector<16x16x64xbf16> to vector<256x64xbf16>
    %c8 = arith.constant 8 : index
    %c0_29 = arith.constant 0 : index
    %c0_30 = arith.constant 0 : index
    %58 = vector.load %arg2[%c8, %c0_29, %c0_30] : memref<9x64x32xbf16, #tpu.memory_space<vmem>>, vector<1x64x32xbf16>
    %59 = vector.shape_cast %58 : vector<1x64x32xbf16> to vector<64x32xbf16>
    %cst_31 = arith.constant dense<0.000000e+00> : vector<256x32xf32>
    %60 = tpu.matmul %57, %59, %cst_31 {dimension_numbers = #tpu.dot_dimension_numbers<[1], [0], [0], [1], [0, 0, 1, 1], [], []>} : vector<256x64xbf16>, vector<64x32xbf16>, vector<256x32xf32> -> vector<256x32xf32>
    %61 = arith.addf %55, %60 : vector<256x32xf32>
    %62 = vector.broadcast %8 : vector<1x32xf32> to vector<256x32xf32>
    %63 = arith.addf %61, %62 : vector<256x32xf32>
    %cst_32 = arith.constant 0.000000e+00 : f32
    %64 = vector.broadcast %cst_32 : f32 to vector<256x32xf32>
    %65 = arith.cmpf ogt, %63, %64 : vector<256x32xf32>
    %cst_33 = arith.constant 0.000000e+00 : f32
    %66 = vector.broadcast %cst_33 : f32 to vector<256x32xf32>
    %67 = arith.minimumf %63, %66 : vector<256x32xf32>
    %68 = math.exp %67 : vector<256x32xf32>
    %cst_34 = arith.constant 1.000000e+00 : f32
    %69 = vector.broadcast %cst_34 : f32 to vector<256x32xf32>
    %70 = arith.subf %68, %69 : vector<256x32xf32>
    %71 = arith.select %65, %63, %70 : vector<256x32xi1>, vector<256x32xf32>
    %72 = vector.shape_cast %71 : vector<256x32xf32> to vector<16x16x32xf32>
    %73 = arith.truncf %72 : vector<16x16x32xf32> to vector<16x16x32xbf16>
    %74 = vector.extract_strided_slice %73 {offsets = [1, 0, 0], sizes = [1, 16, 32], strides = [1, 1, 1]} : vector<16x16x32xbf16> to vector<1x16x32xbf16>
    %75 = vector.extract_strided_slice %73 {offsets = [14, 0, 0], sizes = [1, 16, 32], strides = [1, 1, 1]} : vector<16x16x32xbf16> to vector<1x16x32xbf16>
    %76 = tpu.concatenate %74, %73, %75 in 0 : vector<1x16x32xbf16>, vector<16x16x32xbf16>, vector<1x16x32xbf16> -> vector<18x16x32xbf16>
    %77 = vector.extract_strided_slice %76 {offsets = [0, 1, 0], sizes = [18, 1, 32], strides = [1, 1, 1]} : vector<18x16x32xbf16> to vector<18x1x32xbf16>
    %78 = vector.extract_strided_slice %76 {offsets = [0, 14, 0], sizes = [18, 1, 32], strides = [1, 1, 1]} : vector<18x16x32xbf16> to vector<18x1x32xbf16>
    %79 = tpu.concatenate %77, %76, %78 in 1 : vector<18x1x32xbf16>, vector<18x16x32xbf16>, vector<18x1x32xbf16> -> vector<18x18x32xbf16>
    %c0_35 = arith.constant 0 : index
    %c0_36 = arith.constant 0 : index
    %80 = vector.load %arg5[%c0_35, %c0_36] : memref<32x1xf32, #tpu.memory_space<vmem>>, vector<32x1xf32>
    %81 = vector.extract_strided_slice %79 {offsets = [0, 0, 0], sizes = [16, 16, 32], strides = [1, 1, 1]} : vector<18x18x32xbf16> to vector<16x16x32xbf16>
    %82 = vector.shape_cast %81 : vector<16x16x32xbf16> to vector<256x32xbf16>
    %c0_37 = arith.constant 0 : index
    %c0_38 = arith.constant 0 : index
    %c0_39 = arith.constant 0 : index
    %83 = vector.load %arg4[%c0_37, %c0_38, %c0_39] : memref<9x32x32xbf16, #tpu.memory_space<vmem>>, vector<1x32x32xbf16>
    %84 = vector.shape_cast %83 : vector<1x32x32xbf16> to vector<32x32xbf16>
    %cst_40 = arith.constant dense<0.000000e+00> : vector<32x256xf32>
    %85 = tpu.matmul %84, %82, %cst_40 {dimension_numbers = #tpu.dot_dimension_numbers<[1], [1], [0], [0], [0, 0, 1, 0], [], []>} : vector<32x32xbf16>, vector<256x32xbf16>, vector<32x256xf32> -> vector<32x256xf32>
    %86 = vector.extract_strided_slice %79 {offsets = [0, 1, 0], sizes = [16, 16, 32], strides = [1, 1, 1]} : vector<18x18x32xbf16> to vector<16x16x32xbf16>
    %87 = vector.shape_cast %86 : vector<16x16x32xbf16> to vector<256x32xbf16>
    %c1_41 = arith.constant 1 : index
    %c0_42 = arith.constant 0 : index
    %c0_43 = arith.constant 0 : index
    %88 = vector.load %arg4[%c1_41, %c0_42, %c0_43] : memref<9x32x32xbf16, #tpu.memory_space<vmem>>, vector<1x32x32xbf16>
    %89 = vector.shape_cast %88 : vector<1x32x32xbf16> to vector<32x32xbf16>
    %cst_44 = arith.constant dense<0.000000e+00> : vector<32x256xf32>
    %90 = tpu.matmul %89, %87, %cst_44 {dimension_numbers = #tpu.dot_dimension_numbers<[1], [1], [0], [0], [0, 0, 1, 0], [], []>} : vector<32x32xbf16>, vector<256x32xbf16>, vector<32x256xf32> -> vector<32x256xf32>
    %91 = arith.addf %85, %90 : vector<32x256xf32>
    %92 = vector.extract_strided_slice %79 {offsets = [0, 2, 0], sizes = [16, 16, 32], strides = [1, 1, 1]} : vector<18x18x32xbf16> to vector<16x16x32xbf16>
    %93 = vector.shape_cast %92 : vector<16x16x32xbf16> to vector<256x32xbf16>
    %c2_45 = arith.constant 2 : index
    %c0_46 = arith.constant 0 : index
    %c0_47 = arith.constant 0 : index
    %94 = vector.load %arg4[%c2_45, %c0_46, %c0_47] : memref<9x32x32xbf16, #tpu.memory_space<vmem>>, vector<1x32x32xbf16>
    %95 = vector.shape_cast %94 : vector<1x32x32xbf16> to vector<32x32xbf16>
    %cst_48 = arith.constant dense<0.000000e+00> : vector<32x256xf32>
    %96 = tpu.matmul %95, %93, %cst_48 {dimension_numbers = #tpu.dot_dimension_numbers<[1], [1], [0], [0], [0, 0, 1, 0], [], []>} : vector<32x32xbf16>, vector<256x32xbf16>, vector<32x256xf32> -> vector<32x256xf32>
    %97 = arith.addf %91, %96 : vector<32x256xf32>
    %98 = vector.extract_strided_slice %79 {offsets = [1, 0, 0], sizes = [16, 16, 32], strides = [1, 1, 1]} : vector<18x18x32xbf16> to vector<16x16x32xbf16>
    %99 = vector.shape_cast %98 : vector<16x16x32xbf16> to vector<256x32xbf16>
    %c3_49 = arith.constant 3 : index
    %c0_50 = arith.constant 0 : index
    %c0_51 = arith.constant 0 : index
    %100 = vector.load %arg4[%c3_49, %c0_50, %c0_51] : memref<9x32x32xbf16, #tpu.memory_space<vmem>>, vector<1x32x32xbf16>
    %101 = vector.shape_cast %100 : vector<1x32x32xbf16> to vector<32x32xbf16>
    %cst_52 = arith.constant dense<0.000000e+00> : vector<32x256xf32>
    %102 = tpu.matmul %101, %99, %cst_52 {dimension_numbers = #tpu.dot_dimension_numbers<[1], [1], [0], [0], [0, 0, 1, 0], [], []>} : vector<32x32xbf16>, vector<256x32xbf16>, vector<32x256xf32> -> vector<32x256xf32>
    %103 = arith.addf %97, %102 : vector<32x256xf32>
    %104 = vector.extract_strided_slice %79 {offsets = [1, 1, 0], sizes = [16, 16, 32], strides = [1, 1, 1]} : vector<18x18x32xbf16> to vector<16x16x32xbf16>
    %105 = vector.shape_cast %104 : vector<16x16x32xbf16> to vector<256x32xbf16>
    %c4_53 = arith.constant 4 : index
    %c0_54 = arith.constant 0 : index
    %c0_55 = arith.constant 0 : index
    %106 = vector.load %arg4[%c4_53, %c0_54, %c0_55] : memref<9x32x32xbf16, #tpu.memory_space<vmem>>, vector<1x32x32xbf16>
    %107 = vector.shape_cast %106 : vector<1x32x32xbf16> to vector<32x32xbf16>
    %cst_56 = arith.constant dense<0.000000e+00> : vector<32x256xf32>
    %108 = tpu.matmul %107, %105, %cst_56 {dimension_numbers = #tpu.dot_dimension_numbers<[1], [1], [0], [0], [0, 0, 1, 0], [], []>} : vector<32x32xbf16>, vector<256x32xbf16>, vector<32x256xf32> -> vector<32x256xf32>
    %109 = arith.addf %103, %108 : vector<32x256xf32>
    %110 = vector.extract_strided_slice %79 {offsets = [1, 2, 0], sizes = [16, 16, 32], strides = [1, 1, 1]} : vector<18x18x32xbf16> to vector<16x16x32xbf16>
    %111 = vector.shape_cast %110 : vector<16x16x32xbf16> to vector<256x32xbf16>
    %c5_57 = arith.constant 5 : index
    %c0_58 = arith.constant 0 : index
    %c0_59 = arith.constant 0 : index
    %112 = vector.load %arg4[%c5_57, %c0_58, %c0_59] : memref<9x32x32xbf16, #tpu.memory_space<vmem>>, vector<1x32x32xbf16>
    %113 = vector.shape_cast %112 : vector<1x32x32xbf16> to vector<32x32xbf16>
    %cst_60 = arith.constant dense<0.000000e+00> : vector<32x256xf32>
    %114 = tpu.matmul %113, %111, %cst_60 {dimension_numbers = #tpu.dot_dimension_numbers<[1], [1], [0], [0], [0, 0, 1, 0], [], []>} : vector<32x32xbf16>, vector<256x32xbf16>, vector<32x256xf32> -> vector<32x256xf32>
    %115 = arith.addf %109, %114 : vector<32x256xf32>
    %116 = vector.extract_strided_slice %79 {offsets = [2, 0, 0], sizes = [16, 16, 32], strides = [1, 1, 1]} : vector<18x18x32xbf16> to vector<16x16x32xbf16>
    %117 = vector.shape_cast %116 : vector<16x16x32xbf16> to vector<256x32xbf16>
    %c6_61 = arith.constant 6 : index
    %c0_62 = arith.constant 0 : index
    %c0_63 = arith.constant 0 : index
    %118 = vector.load %arg4[%c6_61, %c0_62, %c0_63] : memref<9x32x32xbf16, #tpu.memory_space<vmem>>, vector<1x32x32xbf16>
    %119 = vector.shape_cast %118 : vector<1x32x32xbf16> to vector<32x32xbf16>
    %cst_64 = arith.constant dense<0.000000e+00> : vector<32x256xf32>
    %120 = tpu.matmul %119, %117, %cst_64 {dimension_numbers = #tpu.dot_dimension_numbers<[1], [1], [0], [0], [0, 0, 1, 0], [], []>} : vector<32x32xbf16>, vector<256x32xbf16>, vector<32x256xf32> -> vector<32x256xf32>
    %121 = arith.addf %115, %120 : vector<32x256xf32>
    %122 = vector.extract_strided_slice %79 {offsets = [2, 1, 0], sizes = [16, 16, 32], strides = [1, 1, 1]} : vector<18x18x32xbf16> to vector<16x16x32xbf16>
    %123 = vector.shape_cast %122 : vector<16x16x32xbf16> to vector<256x32xbf16>
    %c7_65 = arith.constant 7 : index
    %c0_66 = arith.constant 0 : index
    %c0_67 = arith.constant 0 : index
    %124 = vector.load %arg4[%c7_65, %c0_66, %c0_67] : memref<9x32x32xbf16, #tpu.memory_space<vmem>>, vector<1x32x32xbf16>
    %125 = vector.shape_cast %124 : vector<1x32x32xbf16> to vector<32x32xbf16>
    %cst_68 = arith.constant dense<0.000000e+00> : vector<32x256xf32>
    %126 = tpu.matmul %125, %123, %cst_68 {dimension_numbers = #tpu.dot_dimension_numbers<[1], [1], [0], [0], [0, 0, 1, 0], [], []>} : vector<32x32xbf16>, vector<256x32xbf16>, vector<32x256xf32> -> vector<32x256xf32>
    %127 = arith.addf %121, %126 : vector<32x256xf32>
    %128 = vector.extract_strided_slice %79 {offsets = [2, 2, 0], sizes = [16, 16, 32], strides = [1, 1, 1]} : vector<18x18x32xbf16> to vector<16x16x32xbf16>
    %129 = vector.shape_cast %128 : vector<16x16x32xbf16> to vector<256x32xbf16>
    %c8_69 = arith.constant 8 : index
    %c0_70 = arith.constant 0 : index
    %c0_71 = arith.constant 0 : index
    %130 = vector.load %arg4[%c8_69, %c0_70, %c0_71] : memref<9x32x32xbf16, #tpu.memory_space<vmem>>, vector<1x32x32xbf16>
    %131 = vector.shape_cast %130 : vector<1x32x32xbf16> to vector<32x32xbf16>
    %cst_72 = arith.constant dense<0.000000e+00> : vector<32x256xf32>
    %132 = tpu.matmul %131, %129, %cst_72 {dimension_numbers = #tpu.dot_dimension_numbers<[1], [1], [0], [0], [0, 0, 1, 0], [], []>} : vector<32x32xbf16>, vector<256x32xbf16>, vector<32x256xf32> -> vector<32x256xf32>
    %133 = arith.addf %127, %132 : vector<32x256xf32>
    %134 = vector.broadcast %80 : vector<32x1xf32> to vector<32x256xf32>
    %135 = arith.addf %133, %134 : vector<32x256xf32>
    %cst_73 = arith.constant 0.000000e+00 : f32
    %136 = vector.broadcast %cst_73 : f32 to vector<32x256xf32>
    %137 = arith.cmpf ogt, %135, %136 : vector<32x256xf32>
    %cst_74 = arith.constant 0.000000e+00 : f32
    %138 = vector.broadcast %cst_74 : f32 to vector<32x256xf32>
    %139 = arith.minimumf %135, %138 : vector<32x256xf32>
    %140 = math.exp %139 : vector<32x256xf32>
    %cst_75 = arith.constant 1.000000e+00 : f32
    %141 = vector.broadcast %cst_75 : f32 to vector<32x256xf32>
    %142 = arith.subf %140, %141 : vector<32x256xf32>
    %143 = arith.select %137, %135, %142 : vector<32x256xi1>, vector<32x256xf32>
    %c0_76 = arith.constant 0 : index
    %c0_77 = arith.constant 0 : index
    %c0_78 = arith.constant 0 : index
    %144 = vector.load %arg6[%c0_76, %c0_77, %c0_78] : memref<1x32x256xf32, #tpu.memory_space<vmem>>, vector<1x32x256xf32>
    %145 = vector.shape_cast %144 : vector<1x32x256xf32> to vector<32x256xf32>
    %146 = vector.shape_cast %143 : vector<32x256xf32> to vector<1x32x256xf32>
    tpu.vector_store %arg6[%c0_76, %c0_77, %c0_78], %146 {strides = array<i32>} : memref<1x32x256xf32, #tpu.memory_space<vmem>>, vector<1x32x256xf32>,
    return
  }
  func.func @transform_0(%arg0: i32) -> (i32, i32, i32, i32) {
    %c0_i32 = arith.constant 0 : i32
    %c0_i32_0 = arith.constant 0 : i32
    %c0_i32_1 = arith.constant 0 : i32
    %c0_i32_2 = arith.constant 0 : i32
    return %arg0, %c0_i32, %c0_i32_0, %c0_i32_1 : i32, i32, i32, i32
  }
  func.func @transform_1(%arg0: i32) -> (i32, i32, i32) {
    %c0_i32 = arith.constant 0 : i32
    %c0_i32_0 = arith.constant 0 : i32
    %c0_i32_1 = arith.constant 0 : i32
    %c0_i32_2 = arith.constant 0 : i32
    return %c0_i32, %c0_i32_0, %c0_i32_1 : i32, i32, i32
  }
  func.func @transform_2(%arg0: i32) -> (i32, i32) {
    %c0_i32 = arith.constant 0 : i32
    %c0_i32_0 = arith.constant 0 : i32
    %c0_i32_1 = arith.constant 0 : i32
    return %c0_i32, %c0_i32_0 : i32, i32
  }
  func.func @transform_3(%arg0: i32) -> (i32, i32, i32) {
    %c0_i32 = arith.constant 0 : i32
    %c0_i32_0 = arith.constant 0 : i32
    %c0_i32_1 = arith.constant 0 : i32
    %c0_i32_2 = arith.constant 0 : i32
    return %c0_i32, %c0_i32_0, %c0_i32_1 : i32, i32, i32
  }
  func.func @transform_4(%arg0: i32) -> (i32, i32) {
    %c0_i32 = arith.constant 0 : i32
    %c0_i32_0 = arith.constant 0 : i32
    %c0_i32_1 = arith.constant 0 : i32
    return %c0_i32, %c0_i32_0 : i32, i32
  }
  func.func @transform_5(%arg0: i32) -> (i32, i32, i32) {
    %c0_i32 = arith.constant 0 : i32
    %c0_i32_0 = arith.constant 0 : i32
    %c0_i32_1 = arith.constant 0 : i32
    return %arg0, %c0_i32, %c0_i32_0 : i32, i32, i32
  }
}

</mosaic_0001>

<bundles_post_ra>
// kernel: conv_upsample_block.1
= control target key start
LH: loop header
LB: loop body
LE: loop exit
PB: predicated region body
PF: predicated region fallthrough
CT: control target
= control target key end

     0   :  { %s6559_s18 = smov 0   ;;  %s8399_s0 = inlined_call_operand.vmem [shape: bf16[2,16,16,64], index: 0, kind: input, shape index: {}]   ;;  %s8400_s1 = inlined_call_operand.vmem [shape: bf16[9,64,32], index: 1, kind: input, shape index: {}]   ;;  %s8401_s2 = inlined_call_operand.vmem [shape: f32[1,32], index: 2, kind: input, shape index: {}]   ;;  %s8402_s3 = inlined_call_operand.vmem [shape: bf16[9,32,32], index: 3, kind: input, shape index: {}]   ;;  %s8403_s4 = inlined_call_operand.vmem [shape: f32[32,1], index: 4, kind: input, shape index: {}]   ;;  %s8404_s5 = inlined_call_operand.vmem [shape: f32[2,32,256], index: 5, kind: output, shape index: {}]  }
   0x1 LB: > { %s4801_s19 = sadd.s32 4294967295, %s6526_s18   ;;  %p4805_p0 = scmp.ge.s32.totalorder %s6526_s18, 1  ;;  %s6526_s18 = sphi %s6559_s18, %s15_s18  }
   0x2   : > { %p187_p1 = scmp.lt.s32.totalorder %s6526_s18, 3 }
   0x4   : > { %p188_p2 = pnand %p4805_p0, %p187_p1 }
   0x6   : > { %191 = sbr.rel (%p188_p2) target bundleno = 1668 (0x684), region = 40 }
   0xd   : > { %v6338_v0 = vld [vmem:[%s8400_s1 + $0x20] sm:$0xff]   ;;  %p215_p3 = scmp.lt.s32.totalorder %s4801_s19, 1  ;;  %v6339_v1 = vld [vmem:[%s8400_s1 + $0x28] sm:$0xff]   ;;  %v6340_v2 = vld [vmem:[%s8400_s1 + $0x30] sm:$0xff]   ;;  %vm658_vm0 = vcmask 1040384   ;;  %vm916_vm3 = vcmask 523264  }
   0xe   : > { %5575 = vmatprep.subr.bf16.mxu0 %v6338_v0  ;;  %vm659_vm1 = vsmask.f32 256  ;;  %v6341_v13 = vld [vmem:[%s8400_s1 + $0x38] sm:$0xff]   ;;  %v6602_v31 = vld [vmem:[%s8400_s1] sm:$0xff]   ;;  %vm702_vm4 = vsmask.f32 7424 }
   0xf   : > { %s8411_s19 = smov (!%p215_p3, %s4801_s19), 1  ;;  %5576 = vmatpush3.bf16.msra.mxu0 %v6338_v0  ;;  %vm6595_vm2 = vmand %vm658_vm0, %vm659_vm1  ;;  %vm1368_vm5 = vcmask 1046528   ;;  %vm3739_vm10 = vcmask 261120  }
  0x10   : > { %5577 = vmatprep.subr.bf16.mxu0 %v6339_v1  ;;  %s5213_s26 = sshll.u32 %s8411_s19, 7  ;;  %s5214_s27 = sshll.u32 %s8411_s19, 6 }
  0x11   : > { %s6582_s29 = scalar_lea.vmem %s8399_s0, %s5213_s26  ;;  %s8386_s6 = scalar_lea.vmem %s8404_s5, %s5214_s27 }
  0x12   : > { %v228_v3 = vld [vmem:[%s6582_s29 + $0x8] sm:$0xf]  ;;  %v229_v4 = vld [vmem:[%s6582_s29 + $0xc] sm:$0xf]  ;;  %v226_v5 = vld [vmem:[%s6582_s29] sm:$0xf] }
  0x13   : > { %5578 = vmatpush3.bf16.msra.mxu0 %v6339_v1  ;;  %v4810_v6 = vcombine.low %v228_v3, %v228_v3  ;;  %v4826_v7 = vcombine.low %v228_v3, %v229_v4  ;;  %v4842_v8 = vcombine.low %v229_v4, %v229_v4  ;;  %v227_v9 = vld [vmem:[%s6582_s29 + $0x4] sm:$0xf]  ;;  %v4811_v10 = vcombine.low %v226_v5, %v226_v5  ;;  %v230_v11 = vld [vmem:[%s6582_s29 + $0x10] sm:$0xf]  ;;  %v231_v12 = vld [vmem:[%s6582_s29 + $0x14] sm:$0xf] }
  0x14   : > { %5579 = vmatprep.subr.bf16.mxu0 %v6340_v2  ;;  %v4827_v14 = vcombine.low %v226_v5, %v227_v9  ;;  %v4843_v15 = vcombine.low %v227_v9, %v227_v9  ;;  %v4812_v16 = vcombine.low %v230_v11, %v230_v11  ;;  %v4828_v17 = vcombine.low %v230_v11, %v231_v12  ;;  %v232_v36 = vld [vmem:[%s6582_s29 + $0x18] sm:$0xf]  ;;  %v233_v48 = vld [vmem:[%s6582_s29 + $0x1c] sm:$0xf]  ;;  %v234_v61 = vld [vmem:[%s6582_s29 + $0x20] sm:$0xf] }
  0x15   : > { %v307_v18 = vshrl.u32 %v4810_v6, 16  ;;  %v419_v19 = vshrl.u32 %v4826_v7, 16  ;;  %v422_v20 = vshll.u32 %v4826_v7, 16  ;;  %v579_v21 = vshll.u32 %v4842_v8, 16 }
  0x16   : > { %v310_v22 = vshrl.u32 %v4811_v10, 16  ;;  %v426_v23 = vshrl.u32 %v4827_v14, 16  ;;  %v429_v24 = vshll.u32 %v4827_v14, 16  ;;  %v583_v25 = vshll.u32 %v4843_v15, 16  ;;  %v6355_v10 = vld [vmem:[%s8400_s1 + $0x8] sm:$0xff]  }
  0x17   : > { %5580 = vmatpush3.bf16.msra.mxu0 %v6340_v2  ;;  %v421_v26 = vrot.slane %v419_v19, 7  ;;  %v581_v27 = vrot.slane %v579_v21, 3  ;;  %v313_v28 = vshrl.u32 %v4812_v16, 16  ;;  %v433_v29 = vshrl.u32 %v4828_v17, 16  ;;  %v235_v2 = vld [vmem:[%s6582_s29 + $0x24] sm:$0xf] }
  0x18   : > { %5581 = vmatprep.subr.bf16.mxu0 %v6341_v13  ;;  %v428_v32 = vrot.slane %v426_v23, 7  ;;  %v585_v33 = vrot.slane %v583_v25, 3  ;;  %v436_v34 = vshll.u32 %v4828_v17, 16  ;;  %v4844_v35 = vcombine.low %v231_v12, %v231_v12  ;;  %v236_v16 = vld [vmem:[%s6582_s29 + $0x28] sm:$0xf] }
  0x19   : > { %v424_v37 = vor.u32 %v422_v20, %v421_v26  ;;  %v6607_v38 = vsel %vm6595_vm2, %v421_v26, %v581_v27  ;;  %v435_v39 = vrot.slane %v433_v29, 7  ;;  %v4813_v40 = vcombine.low %v232_v36, %v232_v36  ;;  %v237_v17 = vld [vmem:[%s6582_s29 + $0x2c] sm:$0xf] }
  0x1a   : > { %v711_v41 = vshll.u32 %v6607_v38, 16  ;;  %v431_v42 = vor.u32 %v429_v24, %v428_v32  ;;  %v6612_v43 = vsel %vm6595_vm2, %v428_v32, %v585_v33  ;;  %v587_v44 = vshll.u32 %v4844_v35, 16 }
  0x1b   : > { %5582 = vmatpush3.bf16.msra.mxu0 %v6341_v13  ;;  %v6616_v45 = vsel %vm6595_vm2, %v307_v18, %v424_v37  ;;  %v723_v46 = vshll.u32 %v6612_v43, 16  ;;  %v438_v47 = vor.u32 %v436_v34, %v435_v39  ;;  %v316_v59 = vshrl.u32 %v4813_v40, 16 }
  0x1c   : > { %v704_v49 = vshrl.u32 %v6616_v45, 16  ;;  %v706_v50 = vshll.u32 %v6616_v45, 16  ;;  %v713_v51 = vrot.slane %v711_v41, 1  ;;  %5615 = vmatprep.subr.bf16.mxu0 %v6602_v31  ;;  %v6625_v52 = vsel %vm6595_vm2, %v310_v22, %v431_v42  ;;  %v239_v42 = vld [vmem:[%s6582_s29 + $0x34] sm:$0xf] }
  0x1d   : > { %v716_v53 = vshrl.u32 %v6625_v52, 16  ;;  %v718_v54 = vshll.u32 %v6625_v52, 16  ;;  %v725_v55 = vrot.slane %v723_v46, 1  ;;  %v589_v56 = vrot.slane %v587_v44, 3 }
  0x1e   : > { %v708_v57 = vrot.slane %v706_v50, 1  ;;  %v6631_v58 = vsel %vm6595_vm2, %v313_v28, %v438_v47  ;;  %v4829_v60 = vcombine.low %v232_v36, %v233_v48  ;;  %v4845_v9 = vcombine.low %v233_v48, %v233_v48  ;;  %v238_v36 = vld [vmem:[%s6582_s29 + $0x30] sm:$0xf] }
  0x1f   : > { %v720_v62 = vrot.slane %v718_v54, 1  ;;  %v6636_v63 = vsel %vm6595_vm2, %v435_v39, %v589_v56  ;;  %v728_v0 = vshrl.u32 %v6631_v58, 16  ;;  %v730_v1 = vshll.u32 %v6631_v58, 16  ;;  %v6381_v54 = vld [vmem:[%s8400_s1 + $0x18] sm:$0xff]  }
  0x20   : > { %v709_v3 = vor.u32 %v708_v57, %v704_v49  ;;  %v735_v4 = vshll.u32 %v6636_v63, 16  ;;  %v440_v5 = vshrl.u32 %v4829_v60, 16  ;;  %v443_v6 = vshll.u32 %v4829_v60, 16 }
  0x21   : > { %v721_v7 = vor.u32 %v720_v62, %v716_v53  ;;  %v732_v8 = vrot.slane %v730_v1, 1  ;;  %v4814_v11 = vcombine.low %v234_v61, %v234_v61  ;;  %v4830_v15 = vcombine.low %v234_v61, %v235_v2  ;;  %v240_v1 = vld [vmem:[%s6582_s29 + $0x38] sm:$0xf] }
  0x22   : > { %v6646_v12 = vsel %vm702_vm4, %v709_v3, %v713_v51  ;;  %v737_v13 = vrot.slane %v735_v4, 1  ;;  %v442_v14 = vrot.slane %v440_v5, 7  ;;  %v591_v20 = vshll.u32 %v4845_v9, 16 }
  0x23   : > { %5583 = vmatprep.mubr.msk.bf16.mxu0 %vm916_vm3, %v6646_v12  ;;  %v6653_v18 = vsel %vm702_vm4, %v721_v7, %v725_v55  ;;  %v733_v19 = vor.u32 %v732_v8, %v728_v0  ;;  %v319_v21 = vshrl.u32 %v4814_v11, 16  ;;  %v447_v23 = vshrl.u32 %v4830_v15, 16  ;;  %v6700_v7 = vld [vmem:[%s8400_s1 + $0x40] sm:$0xff]  }
  0x24   : > { %5584 = vmatmul.mubr.msk.bf16.vlgmr.msra.gmra.mrb[0].mxu0 %vm916_vm3, %v6653_v18  ;;  %v445_v22 = vor.u32 %v443_v6, %v442_v14  ;;  %v450_v24 = vshll.u32 %v4830_v15, 16  ;;  %v4846_v25 = vcombine.low %v235_v2, %v235_v2  ;;  %v593_v27 = vrot.slane %v591_v20, 3  ;;  %v241_v2 = vld [vmem:[%s6582_s29 + $0x3c] sm:$0xf] }
  0x25   : > { %5616 = vmatpush3.bf16.msra.mxu0 %v6602_v31  ;;  %5587 = vmatprep.mubr.msk.bf16.mxu0 %vm916_vm3, %v6646_v12  ;;  %v6661_v26 = vsel %vm702_vm4, %v733_v19, %v737_v13  ;;  %v4815_v28 = vcombine.low %v236_v16, %v236_v16  ;;  %v4831_v29 = vcombine.low %v236_v16, %v237_v17  ;;  %v449_v33 = vrot.slane %v447_v23, 7  ;;  %v6368_v31 = vld [vmem:[%s8400_s1 + $0x10] sm:$0xff]   ;;  %v243_v23 = vld [vmem:[%s6582_s29 + $0x44] sm:$0xf] }
  0x26   : > { %v6665_v32 = vsel %vm6595_vm2, %v316_v59, %v445_v22  ;;  %5617 = vmatprep.subr.bf16.mxu0 %v6355_v10  ;;  %v595_v34 = vshll.u32 %v4846_v25, 16  ;;  %v4847_v35 = vcombine.low %v237_v17, %v237_v17  ;;  %v6673_v37 = vsel %vm6595_vm2, %v442_v14, %v593_v27  ;;  %v242_v22 = vld [vmem:[%s6582_s29 + $0x40] sm:$0xf] }
  0x27   : > { %v740_v39 = vshrl.u32 %v6665_v32, 16  ;;  %v742_v40 = vshll.u32 %v6665_v32, 16  ;;  %v322_v41 = vshrl.u32 %v4815_v28, 16  ;;  %v747_v44 = vshll.u32 %v6673_v37, 16 }
  0x28   : > { %v452_v46 = vor.u32 %v450_v24, %v449_v33  ;;  %v597_v47 = vrot.slane %v595_v34, 3  ;;  %v454_v48 = vshrl.u32 %v4831_v29, 16  ;;  %v457_v50 = vshll.u32 %v4831_v29, 16 }
  0x29   : > { %v744_v49 = vrot.slane %v742_v40, 1  ;;  %5618 = vmatpush3.bf16.msra.mxu0 %v6355_v10  ;;  %v599_v51 = vshll.u32 %v4847_v35, 16  ;;  %v4816_v53 = vcombine.low %v238_v36, %v238_v36  ;;  %v749_v55 = vrot.slane %v747_v44, 1 }
  0x2a   : > { %v6684_v56 = vsel %vm6595_vm2, %v319_v21, %v452_v46  ;;  %v6688_v57 = vsel %vm6595_vm2, %v449_v33, %v597_v47  ;;  %v456_v59 = vrot.slane %v454_v48, 7  ;;  %5619 = vmatprep.subr.bf16.mxu0 %v6368_v31  ;;  %v4832_v6 = vcombine.low %v238_v36, %v239_v42 }
  0x2b   : > { %v745_v60 = vor.u32 %v744_v49, %v740_v39  ;;  %v752_v61 = vshrl.u32 %v6684_v56, 16  ;;  %v754_v62 = vshll.u32 %v6684_v56, 16  ;;  %v759_v0 = vshll.u32 %v6688_v57, 16 }
  0x2c   : > { %5588 = vmatmul.mubr.msk.bf16.gmra.mrb[4].mxu0 %vm916_vm3, %v6661_v26  ;;  %v459_v3 = vor.u32 %v457_v50, %v456_v59  ;;  %v601_v4 = vrot.slane %v599_v51, 3  ;;  %v325_v5 = vshrl.u32 %v4816_v53, 16  ;;  %v4848_v11 = vcombine.low %v239_v42, %v239_v42 }
  0x2d   : > { %v6703_v8 = vsel %vm702_vm4, %v745_v60, %v749_v55  ;;  %v756_v9 = vrot.slane %v754_v62, 1  ;;  %v761_v10 = vrot.slane %v759_v0, 1  ;;  %5620 = vmatpush3.bf16.msra.mxu0 %v6368_v31  ;;  %v461_v15 = vshrl.u32 %v4832_v6, 16  ;;  %v245_v60 = vld [vmem:[%s6582_s29 + $0x4c] sm:$0xf] }
  0x2e   : > { %5591 = vmatprep.mubr.msk.bf16.mxu0 %vm916_vm3, %v6703_v8  ;;  %v6709_v13 = vsel %vm6595_vm2, %v322_v41, %v459_v3  ;;  %v6713_v14 = vsel %vm6595_vm2, %v456_v59, %v601_v4  ;;  %v464_v16 = vshll.u32 %v4832_v6, 16  ;;  %5621 = vmatprep.subr.bf16.mxu0 %v6381_v54  ;;  %v603_v25 = vshll.u32 %v4848_v11, 16  ;;  %v244_v59 = vld [vmem:[%s6582_s29 + $0x48] sm:$0xf] }
  0x2f   : > { %v757_v17 = vor.u32 %v756_v9, %v752_v61  ;;  %v764_v19 = vshrl.u32 %v6709_v13, 16  ;;  %v766_v20 = vshll.u32 %v6709_v13, 16  ;;  %v771_v21 = vshll.u32 %v6713_v14, 16 }
  0x30   : > { %v463_v24 = vrot.slane %v461_v15, 7  ;;  %v4817_v27 = vcombine.low %v240_v1, %v240_v1  ;;  %v4833_v28 = vcombine.low %v240_v1, %v241_v2  ;;  %v4849_v35 = vcombine.low %v241_v2, %v241_v2 }
  0x31   : > { %v6721_v29 = vsel %vm702_vm4, %v757_v17, %v761_v10  ;;  %v768_v33 = vrot.slane %v766_v20, 1  ;;  %v773_v34 = vrot.slane %v771_v21, 1  ;;  %5622 = vmatpush3.bf16.msra.mxu0 %v6381_v54  ;;  %v605_v31 = vrot.slane %v603_v25, 3  ;;  %v246_v20 = vld [vmem:[%s6582_s29 + $0x50] sm:$0xf] }
  0x32   : > { %v466_v36 = vor.u32 %v464_v16, %v463_v24  ;;  %v328_v39 = vshrl.u32 %v4817_v27, 16  ;;  %v468_v40 = vshrl.u32 %v4833_v28, 16  ;;  %5655 = vmatprep.subr.bf16.mxu0 %v6700_v7  ;;  %v471_v42 = vshll.u32 %v4833_v28, 16  ;;  %v247_v21 = vld [vmem:[%s6582_s29 + $0x54] sm:$0xf] }
  0x33   : > { %v769_v41 = vor.u32 %v768_v33, %v764_v19  ;;  %v607_v44 = vshll.u32 %v4849_v35, 16  ;;  %v4818_v46 = vcombine.low %v242_v22, %v242_v22  ;;  %v6732_v48 = vsel %vm6595_vm2, %v463_v24, %v605_v31 }
  0x34   : > { %5592 = vmatmul.mubr.msk.bf16.gmra.mrb[8].mxu0 %vm916_vm3, %v6721_v29  ;;  %v6728_v47 = vsel %vm6595_vm2, %v325_v5, %v466_v36  ;;  %v470_v49 = vrot.slane %v468_v40, 7  ;;  %v4834_v50 = vcombine.low %v242_v22, %v243_v23  ;;  %v783_v55 = vshll.u32 %v6732_v48, 16 }
  0x35   : > { %v6735_v51 = vsel %vm702_vm4, %v769_v41, %v773_v34  ;;  %v776_v53 = vshrl.u32 %v6728_v47, 16  ;;  %v778_v54 = vshll.u32 %v6728_v47, 16  ;;  %v609_v62 = vrot.slane %v607_v44, 3 }
  0x36   : > { %5595 = vmatprep.mubr.msk.bf16.mxu0 %vm916_vm3, %v6735_v51  ;;  %v473_v61 = vor.u32 %v471_v42, %v470_v49  ;;  %v331_v0 = vshrl.u32 %v4818_v46, 16  ;;  %v475_v1 = vshrl.u32 %v4834_v50, 16  ;;  %v785_v3 = vrot.slane %v783_v55, 1 }
  0x37   : > { %v780_v2 = vrot.slane %v778_v54, 1  ;;  %v478_v4 = vshll.u32 %v4834_v50, 16  ;;  %v4850_v5 = vcombine.low %v243_v23, %v243_v23  ;;  %v6750_v9 = vsel %vm6595_vm2, %v470_v49, %v609_v62  ;;  %v249_v62 = vld [vmem:[%s6582_s29 + $0x5c] sm:$0xf] }
  0x38   : > { %v6746_v6 = vsel %vm6595_vm2, %v328_v39, %v473_v61  ;;  %v477_v10 = vrot.slane %v475_v1, 7  ;;  %v4819_v11 = vcombine.low %v244_v59, %v244_v59  ;;  %v795_v19 = vshll.u32 %v6750_v9, 16  ;;  %v248_v61 = vld [vmem:[%s6582_s29 + $0x58] sm:$0xf] }
  0x39   : > { %v781_v15 = vor.u32 %v780_v2, %v776_v53  ;;  %v788_v16 = vshrl.u32 %v6746_v6, 16  ;;  %v790_v17 = vshll.u32 %v6746_v6, 16  ;;  %v611_v23 = vshll.u32 %v4850_v5, 16 }
  0x3a   : > { %v480_v22 = vor.u32 %v478_v4, %v477_v10  ;;  %v334_v24 = vshrl.u32 %v4819_v11, 16  ;;  %v4835_v25 = vcombine.low %v244_v59, %v245_v60  ;;  %v797_v33 = vrot.slane %v795_v19, 1 }
  0x3b   : > { %v6758_v27 = vsel %vm702_vm4, %v781_v15, %v785_v3  ;;  %v792_v28 = vrot.slane %v790_v17, 1  ;;  %v4851_v34 = vcombine.low %v245_v60, %v245_v60  ;;  %v613_v35 = vrot.slane %v611_v23, 3  ;;  %v250_v15 = vld [vmem:[%s6582_s29 + $0x60] sm:$0xf] }
  0x3c   : > { %5596 = vmatmul.mubr.msk.bf16.gmra.mrb[12].mxu0 %vm916_vm3, %v6758_v27  ;;  %v6764_v36 = vsel %vm6595_vm2, %v331_v0, %v480_v22  ;;  %v482_v31 = vshrl.u32 %v4835_v25, 16  ;;  %v485_v39 = vshll.u32 %v4835_v25, 16  ;;  %v4820_v50 = vcombine.low %v246_v20, %v246_v20 }
  0x3d   : > { %v793_v40 = vor.u32 %v792_v28, %v788_v16  ;;  %v800_v41 = vshrl.u32 %v6764_v36, 16  ;;  %v802_v42 = vshll.u32 %v6764_v36, 16  ;;  %v615_v44 = vshll.u32 %v4851_v34, 16  ;;  %v251_v16 = vld [vmem:[%s6582_s29 + $0x64] sm:$0xf] }
  0x3e   : > { %v6770_v46 = vsel %vm6595_vm2, %v477_v10, %v613_v35  ;;  %v484_v49 = vrot.slane %v482_v31, 7  ;;  %v4836_v53 = vcombine.low %v246_v20, %v247_v21  ;;  %v337_v1 = vshrl.u32 %v4820_v50, 16 }
  0x3f   : > { %v6773_v54 = vsel %vm702_vm4, %v793_v40, %v797_v33  ;;  %v804_v55 = vrot.slane %v802_v42, 1  ;;  %v807_v59 = vshll.u32 %v6770_v46, 16  ;;  %v617_v60 = vrot.slane %v615_v44, 3 }
  0x40   : > { %5599 = vmatprep.mubr.msk.bf16.mxu0 %vm916_vm3, %v6773_v54  ;;  %v487_v0 = vor.u32 %v485_v39, %v484_v49  ;;  %v489_v2 = vshrl.u32 %v4836_v53, 16  ;;  %v492_v3 = vshll.u32 %v4836_v53, 16  ;;  %v4852_v11 = vcombine.low %v247_v21, %v247_v21  ;;  %v252_v53 = vld [vmem:[%s6582_s29 + $0x68] sm:$0xf] }
  0x41   : > { %v805_v4 = vor.u32 %v804_v55, %v800_v41  ;;  %v809_v5 = vrot.slane %v807_v59, 1  ;;  %v6782_v10 = vsel %vm6595_vm2, %v484_v49, %v617_v60  ;;  %v4821_v22 = vcombine.low %v248_v61, %v248_v61  ;;  %v253_v55 = vld [vmem:[%s6582_s29 + $0x6c] sm:$0xf] }
  0x42   : > { %v6788_v17 = vsel %vm6595_vm2, %v334_v24, %v487_v0  ;;  %v819_v19 = vshll.u32 %v6782_v10, 16  ;;  %v491_v20 = vrot.slane %v489_v2, 7  ;;  %v619_v21 = vshll.u32 %v4852_v11, 16 }
  0x43   : > { %v6792_v23 = vsel %vm702_vm4, %v805_v4, %v809_v5  ;;  %v812_v25 = vshrl.u32 %v6788_v17, 16  ;;  %v814_v28 = vshll.u32 %v6788_v17, 16  ;;  %v340_v34 = vshrl.u32 %v4821_v22, 16 }
  0x44   : > { %5600 = vmatmul.mubr.msk.bf16.gmra.mrb[16].mxu0 %vm916_vm3, %v6792_v23  ;;  %v821_v33 = vrot.slane %v819_v19, 1  ;;  %v494_v24 = vor.u32 %v492_v3, %v491_v20  ;;  %v4837_v35 = vcombine.low %v248_v61, %v249_v62  ;;  %v621_v39 = vrot.slane %v619_v21, 3 }
  0x45   : > { %v816_v31 = vrot.slane %v814_v28, 1  ;;  %v4853_v40 = vcombine.low %v249_v62, %v249_v62  ;;  %v4822_v41 = vcombine.low %v250_v15, %v250_v15  ;;  %v4838_v50 = vcombine.low %v250_v15, %v251_v16 }
  0x46   : > { %v6800_v42 = vsel %vm6595_vm2, %v337_v1, %v494_v24  ;;  %v496_v44 = vshrl.u32 %v4837_v35, 16  ;;  %v499_v49 = vshll.u32 %v4837_v35, 16  ;;  %v6806_v60 = vsel %vm6595_vm2, %v491_v20, %v621_v39 }
  0x47   : > { %v817_v59 = vor.u32 %v816_v31, %v812_v25  ;;  %v824_v61 = vshrl.u32 %v6800_v42, 16  ;;  %v826_v0 = vshll.u32 %v6800_v42, 16  ;;  %v831_v62 = vshll.u32 %v6806_v60, 16 }
  0x48   : > { %v498_v2 = vrot.slane %v496_v44, 7  ;;  %v623_v3 = vshll.u32 %v4853_v40, 16  ;;  %v343_v1 = vshrl.u32 %v4822_v41, 16  ;;  %v503_v11 = vshrl.u32 %v4838_v50, 16 }
  0x49   : > { %v6812_v4 = vsel %vm702_vm4, %v817_v59, %v821_v33  ;;  %v828_v5 = vrot.slane %v826_v0, 1  ;;  %v506_v15 = vshll.u32 %v4838_v50, 16  ;;  %v833_v19 = vrot.slane %v831_v62, 1  ;;  %v254_v50 = vld [vmem:[%s6582_s29 + $0x70] sm:$0xf] }
  0x4a   : > { %5603 = vmatprep.mubr.msk.bf16.mxu0 %vm916_vm3, %v6812_v4  ;;  %v501_v20 = vor.u32 %v499_v49, %v498_v2  ;;  %v625_v22 = vrot.slane %v623_v3, 3  ;;  %v4854_v25 = vcombine.low %v251_v16, %v251_v16  ;;  %v505_v21 = vrot.slane %v503_v11, 7 }
  0x4b   : > { %v829_v28 = vor.u32 %v828_v5, %v824_v61  ;;  %v4823_v24 = vcombine.low %v252_v53, %v252_v53  ;;  %v4839_v35 = vcombine.low %v252_v53, %v253_v55  ;;  %v4855_v40 = vcombine.low %v253_v55, %v253_v55  ;;  %v255_v61 = vld [vmem:[%s6582_s29 + $0x74] sm:$0xf] }
  0x4c   : > { %v6818_v33 = vsel %vm6595_vm2, %v340_v34, %v501_v20  ;;  %v6822_v31 = vsel %vm6595_vm2, %v498_v2, %v625_v22  ;;  %v627_v39 = vshll.u32 %v4854_v25, 16  ;;  %v508_v34 = vor.u32 %v506_v15, %v505_v21 }
  0x4d   : > { %v6825_v41 = vsel %vm702_vm4, %v829_v28, %v833_v19  ;;  %v836_v16 = vshrl.u32 %v6818_v33, 16  ;;  %v838_v44 = vshll.u32 %v6818_v33, 16  ;;  %v843_v49 = vshll.u32 %v6822_v31, 16 }
  0x4e   : > { %5604 = vmatmul.mubr.msk.bf16.gmra.mrb[20].mxu0 %vm916_vm3, %v6825_v41  ;;  %v629_v53 = vrot.slane %v627_v39, 3  ;;  %v510_v59 = vshrl.u32 %v4839_v35, 16  ;;  %v513_v55 = vshll.u32 %v4839_v35, 16  ;;  %v631_v2 = vshll.u32 %v4855_v40, 16 }
  0x4f   : > { %v840_v0 = vrot.slane %v838_v44, 1  ;;  %v845_v62 = vrot.slane %v843_v49, 1  ;;  %v6836_v3 = vsel %vm6595_vm2, %v343_v1, %v508_v34  ;;  %v346_v11 = vshrl.u32 %v4823_v24, 16 }
  0x50   : > { %v6840_v5 = vsel %vm6595_vm2, %v505_v21, %v629_v53  ;;  %v512_v19 = vrot.slane %v510_v59, 7  ;;  %v848_v15 = vshrl.u32 %v6836_v3, 16  ;;  %v850_v22 = vshll.u32 %v6836_v3, 16 }
  0x51   : > { %v841_v20 = vor.u32 %v840_v0, %v836_v16  ;;  %v855_v25 = vshll.u32 %v6840_v5, 16  ;;  %v633_v35 = vrot.slane %v631_v2, 3  ;;  %v4824_v39 = vcombine.low %v254_v50, %v254_v50 }
  0x52   : > { %v515_v28 = vor.u32 %v513_v55, %v512_v19  ;;  %v4840_v40 = vcombine.low %v254_v50, %v255_v61  ;;  %v852_v44 = vrot.slane %v850_v22, 1  ;;  %v4856_v21 = vcombine.low %v255_v61, %v255_v61 }
  0x53   : > { %v6846_v1 = vsel %vm702_vm4, %v841_v20, %v845_v62  ;;  %v857_v49 = vrot.slane %v855_v25, 1  ;;  %v6856_v16 = vsel %vm6595_vm2, %v512_v19, %v633_v35  ;;  %v349_v62 = vshrl.u32 %v4824_v39, 16 }
  0x54   : > { %5607 = vmatprep.mubr.msk.bf16.mxu0 %vm916_vm3, %v6846_v1  ;;  %v6852_v24 = vsel %vm6595_vm2, %v346_v11, %v515_v28  ;;  %v517_v34 = vshrl.u32 %v4840_v40, 16  ;;  %v520_v53 = vshll.u32 %v4840_v40, 16  ;;  %v853_v50 = vor.u32 %v852_v44, %v848_v15 }
  0x55   : > { %v860_v59 = vshrl.u32 %v6852_v24, 16  ;;  %v862_v0 = vshll.u32 %v6852_v24, 16  ;;  %v867_v61 = vshll.u32 %v6856_v16, 16  ;;  %v635_v2 = vshll.u32 %v4856_v21, 16 }
  0x56   : > { %v519_v55 = vrot.slane %v517_v34, 7  ;;  %v6862_v20 = vsel %vm702_vm4, %v853_v50, %v857_v49 }
  0x57   : > { %v864_v11 = vrot.slane %v862_v0, 1  ;;  %v869_v22 = vrot.slane %v867_v61, 1  ;;  %5608 = vmatmul.mubr.msk.bf16.gmra.mrb[24].mxu0 %vm916_vm3, %v6862_v20  ;;  %v637_v25 = vrot.slane %v635_v2, 3  ;;  %v6393_v0 = vld [vmem:[%s8400_s1 + $0x50] sm:$0xff]   ;;  %v6394_v61 = vld [vmem:[%s8400_s1 + $0x58] sm:$0xff]  }
  0x58   : > { %v522_v19 = vor.u32 %v520_v53, %v519_v55 }
  0x59   : > { %v865_v15 = vor.u32 %v864_v11, %v860_v59  ;;  %v6872_v35 = vsel %vm6595_vm2, %v519_v55, %v637_v25  ;;  %v6392_v59 = vld [vmem:[%s8400_s1 + $0x48] sm:$0xff]   ;;  %v1370_v55 = vrot.slane %v6607_v38, 1  ;;  %v1373_v11 = vrot.slane %v6612_v43, 1 }
  0x5a   : > { %v6868_v28 = vsel %vm6595_vm2, %v349_v62, %v522_v19  ;;  %v879_v49 = vshll.u32 %v6872_v35, 16  ;;  %v1369_v62 = vrot.slane %v6616_v45, 1  ;;  %v6396_v38 = vld [vmem:[%s8400_s1 + $0x68] sm:$0xff]   ;;  %v1375_v43 = vrot.slane %v6631_v58, 1 }
  0x5b   : > { %v6875_v39 = vsel %vm702_vm4, %v865_v15, %v869_v22  ;;  %v872_v40 = vshrl.u32 %v6868_v28, 16  ;;  %v874_v44 = vshll.u32 %v6868_v28, 16  ;;  %v1372_v22 = vrot.slane %v6625_v52, 1 }
  0x5c   : > { %5611 = vmatprep.mubr.msk.bf16.mxu0 %vm916_vm3, %v6875_v39  ;;  %v881_v34 = vrot.slane %v879_v49, 1  ;;  %v6933_v2 = vsel %vm1368_vm5, %v1369_v62, %v1370_v55  ;;  %v1376_v25 = vrot.slane %v6636_v63, 1  ;;  %v1378_v15 = vrot.slane %v6665_v32, 1  ;;  %v6398_v63 = vld [vmem:[%s8400_s1 + $0x78] sm:$0xff]  }
  0x5d   : > { %v876_v21 = vrot.slane %v874_v44, 1  ;;  %v6942_v19 = vsel %vm1368_vm5, %v1372_v22, %v1373_v11  ;;  %v6397_v44 = vld [vmem:[%s8400_s1 + $0x70] sm:$0xff]   ;;  %v1390_v62 = vrot.slane %v6746_v6, 1  ;;  %v1391_v55 = vrot.slane %v6750_v9, 1 }
  0x5e   : > { %v6959_v49 = vsel %vm1368_vm5, %v1375_v43, %v1376_v25  ;;  %v1396_v43 = vrot.slane %v6788_v17, 1  ;;  %v1397_v9 = vrot.slane %v6782_v10, 1  ;;  %v1403_v10 = vrot.slane %v6822_v31, 1 }
  0x5f   : > { %v877_v53 = vor.u32 %v876_v21, %v872_v40  ;;  %v1379_v40 = vrot.slane %v6673_v37, 1  ;;  %v1381_v37 = vrot.slane %v6684_v56, 1  ;;  %v6996_v22 = vsel %vm1368_vm5, %v1390_v62, %v1391_v55  ;;  %v256_v55 = vld [vmem:[%s6582_s29 + $0x78] sm:$0xf] }
  0x60   : > { %v1409_v31 = vrot.slane %v6856_v16, 1  ;;  %v6400_v16 = vld [vmem:[%s8400_s1 + $0x88] sm:$0xff]  }
  0x61   : > { %v6883_v50 = vsel %vm702_vm4, %v877_v53, %v881_v34  ;;  %v6962_v21 = vsel %vm1368_vm5, %v1378_v15, %v1379_v40  ;;  %v1382_v34 = vrot.slane %v6688_v57, 1  ;;  %v1384_v53 = vrot.slane %v6709_v13, 1 }
  0x62   : > { %5612 = vmatmul.mubr.msk.bf16.gmra.mrb[28].mxu0 %vm916_vm3, %v6883_v50  ;;  %v1387_v57 = vrot.slane %v6728_v47, 1  ;;  %v7010_v15 = vsel %vm1368_vm5, %v1396_v43, %v1397_v9  ;;  %v1399_v40 = vrot.slane %v6800_v42, 1  ;;  %v4825_v9 = vcombine.low %v256_v55, %v256_v55 }
  0x63   : > { %5623 = vmatprep.mubr.msk.bf16.mxu0 %vm916_vm3, %v6616_v45 }
  0x6a   : > { %5624 = vmatmul.mubr.msk.bf16.vlgmr.msra.gmra.mrb[0].mxu0 %vm916_vm3, %v6625_v52 }
  0x6b   : > { %5656 = vmatpush3.bf16.msra.mxu0 %v6700_v7  ;;  %5627 = vmatprep.mubr.msk.bf16.mxu0 %vm916_vm3, %v6616_v45  ;;  %v6395_v7 = vld [vmem:[%s8400_s1 + $0x60] sm:$0xff]  }
  0x6c   : > { %5657 = vmatprep.subr.bf16.mxu0 %v6392_v59 }
  0x6f   : > { %5658 = vmatpush3.bf16.msra.mxu0 %v6392_v59  ;;  %v1385_v59 = vrot.slane %v6713_v14, 1  ;;  %v1388_v14 = vrot.slane %v6732_v48, 1  ;;  %v1394_v48 = vrot.slane %v6770_v46, 1  ;;  %v1400_v46 = vrot.slane %v6806_v60, 1 }
  0x70   : > { %5659 = vmatprep.subr.bf16.mxu0 %v6393_v0  ;;  %v1406_v60 = vrot.slane %v6840_v5, 1  ;;  %v1412_v5 = vrot.slane %v6872_v35, 1  ;;  %v6401_v35 = vld [vmem:[%s8400_s1 + $0x90] sm:$0xff]  }
  0x71   : > { %v6993_v11 = vsel %vm1368_vm5, %v1387_v57, %v1388_v14  ;;  %v1411_v14 = vrot.slane %v6868_v28, 1 }
  0x72   : > { %5628 = vmatmul.mubr.msk.bf16.gmra.mrb[4].mxu0 %vm916_vm3, %v6631_v58 }
  0x73   : > { %5631 = vmatprep.mubr.msk.bf16.mxu0 %vm916_vm3, %v6665_v32  ;;  %5660 = vmatpush3.bf16.msra.mxu0 %v6393_v0  ;;  %v6399_v0 = vld [vmem:[%s8400_s1 + $0x80] sm:$0xff]   ;;  %v7047_v62 = vsel %vm1368_vm5, %v1411_v14, %v1412_v5 }
  0x74   : > { %5661 = vmatprep.subr.bf16.mxu0 %v6394_v61 }
  0x77   : > { %5662 = vmatpush3.bf16.msra.mxu0 %v6394_v61  ;;  %v6979_v61 = vsel %vm1368_vm5, %v1381_v37, %v1382_v34  ;;  %v1405_v34 = vrot.slane %v6836_v3, 1 }
  0x78   : > { %5695 = vmatprep.subr.bf16.mxu0 %v6395_v7 }
  0x7a   : > { %5632 = vmatmul.mubr.msk.bf16.gmra.mrb[8].mxu0 %vm916_vm3, %v6684_v56 }
  0x7b   : > { %5635 = vmatprep.mubr.msk.bf16.mxu0 %vm916_vm3, %v6709_v13 }
  0x82   : > { %5636 = vmatmul.mubr.msk.bf16.gmra.mrb[12].mxu0 %vm916_vm3, %v6728_v47 }
  0x83   : > { %5639 = vmatprep.mubr.msk.bf16.mxu0 %vm916_vm3, %v6746_v6 }
  0x8a   : > { %5640 = vmatmul.mubr.msk.bf16.gmra.mrb[16].mxu0 %vm916_vm3, %v6764_v36 }
  0x8b   : > { %5643 = vmatprep.mubr.msk.bf16.mxu0 %vm916_vm3, %v6788_v17 }
  0x92   : > { %5644 = vmatmul.mubr.msk.bf16.gmra.mrb[20].mxu0 %vm916_vm3, %v6800_v42 }
  0x93   : > { %5647 = vmatprep.mubr.msk.bf16.mxu0 %vm916_vm3, %v6818_v33 }
  0x9a   : > { %5648 = vmatmul.mubr.msk.bf16.gmra.mrb[24].mxu0 %vm916_vm3, %v6836_v3 }
  0x9b   : > { %5651 = vmatprep.mubr.msk.bf16.mxu0 %vm916_vm3, %v6852_v24 }
  0xa2   : > { %5652 = vmatmul.mubr.msk.bf16.gmra.mrb[28].mxu0 %vm916_vm3, %v6868_v28 }
  0xa3   : > { %5663 = vmatprep.mubr.msk.bf16.mxu0 %vm916_vm3, %v6933_v2 }
  0xaa   : > { %5664 = vmatmul.mubr.msk.bf16.vlgmr.msra.gmra.mrb[0].mxu0 %vm916_vm3, %v6942_v19 }
  0xab   : > { %5696 = vmatpush3.bf16.msra.mxu0 %v6395_v7  ;;  %5667 = vmatprep.mubr.msk.bf16.mxu0 %vm916_vm3, %v6933_v2  ;;  %v6982_v7 = vsel %vm1368_vm5, %v1384_v53, %v1385_v59  ;;  %v1408_v53 = vrot.slane %v6852_v24, 1  ;;  %v7035_v59 = vsel %vm1368_vm5, %v1405_v34, %v1406_v60  ;;  %v6407_v60 = vld [vmem:[%s8400_s1 + $0xa8] sm:$0xff]  }
  0xac   : > { %5697 = vmatprep.subr.bf16.mxu0 %v6396_v38 }
  0xad   : > { %v7038_v57 = vsel %vm1368_vm5, %v1408_v53, %v1409_v31  ;;  %v6408_v53 = vld [vmem:[%s8400_s1 + $0xb0] sm:$0xff]   ;;  %v6410_v31 = vld [vmem:[%s8400_s1 + $0xc0] sm:$0xff]  }
  0xaf   : > { %5698 = vmatpush3.bf16.msra.mxu0 %v6396_v38  ;;  %v1393_v38 = vrot.slane %v6764_v36, 1 }
  0xb0   : > { %5699 = vmatprep.subr.bf16.mxu0 %v6397_v44 }
  0xb1   : > { %v7007_v25 = vsel %vm1368_vm5, %v1393_v38, %v1394_v48  ;;  %v257_v38 = vld [vmem:[%s6582_s29 + $0x7c] sm:$0xf] }
  0xb2   : > { %5668 = vmatmul.mubr.msk.bf16.gmra.mrb[4].mxu0 %vm916_vm3, %v6959_v49  ;;  %v4841_v48 = vcombine.low %v256_v55, %v257_v38  ;;  %v4857_v14 = vcombine.low %v257_v38, %v257_v38 }
  0xb3   : > { %5671 = vmatprep.mubr.msk.bf16.mxu0 %vm916_vm3, %v6962_v21  ;;  %5700 = vmatpush3.bf16.msra.mxu0 %v6397_v44  ;;  %v1402_v44 = vrot.slane %v6818_v33, 1 }
  0xb4   : > { %5701 = vmatprep.subr.bf16.mxu0 %v6398_v63  ;;  %v524_v43 = vshrl.u32 %v4841_v48, 16  ;;  %v639_v5 = vshll.u32 %v4857_v14, 16 }
  0xb5   : > { %v7024_v37 = vsel %vm1368_vm5, %v1402_v44, %v1403_v10  ;;  %v352_v44 = vshrl.u32 %v4825_v9, 16 }
  0xb7   : > { %5702 = vmatpush3.bf16.msra.mxu0 %v6398_v63  ;;  %v7021_v63 = vsel %vm1368_vm5, %v1399_v40, %v1400_v46  ;;  %v526_v40 = vrot.slane %v524_v43, 7  ;;  %v527_v46 = vshll.u32 %v4841_v48, 16 }
  0xb8   : > { %5735 = vmatprep.subr.bf16.mxu0 %v6399_v0 }
  0xb9   : > { %v529_v10 = vor.u32 %v527_v46, %v526_v40  ;;  %v6412_v46 = vld [vmem:[%s8400_s1 + $0xd0] sm:$0xff]  }
  0xba   : > { %5672 = vmatmul.mubr.msk.bf16.gmra.mrb[8].mxu0 %vm916_vm3, %v6979_v61 }
  0xbb   : > { %5675 = vmatprep.mubr.msk.bf16.mxu0 %vm916_vm3, %v6982_v7  ;;  %v7097_v34 = vsel %vm6595_vm2, %v352_v44, %v529_v10  ;;  %v6414_v44 = vld [vmem:[%s8400_s1 + $0xe0] sm:$0xff]  }
  0xbc   : > { %v2156_v10 = vrot.slane %v7097_v34, 1 }
  0xc2   : > { %5676 = vmatmul.mubr.msk.bf16.gmra.mrb[12].mxu0 %vm916_vm3, %v6993_v11 }
  0xc3   : > { %5679 = vmatprep.mubr.msk.bf16.mxu0 %vm916_vm3, %v6996_v22 }
  0xca   : > { %5680 = vmatmul.mubr.msk.bf16.gmra.mrb[16].mxu0 %vm916_vm3, %v7007_v25 }
  0xcb   : > { %5683 = vmatprep.mubr.msk.bf16.mxu0 %vm916_vm3, %v7010_v15 }
  0xd2   : > { %5684 = vmatmul.mubr.msk.bf16.gmra.mrb[20].mxu0 %vm916_vm3, %v7021_v63 }
  0xd3   : > { %5687 = vmatprep.mubr.msk.bf16.mxu0 %vm916_vm3, %v7024_v37 }
  0xda   : > { %5688 = vmatmul.mubr.msk.bf16.gmra.mrb[24].mxu0 %vm916_vm3, %v7035_v59 }
  0xdb   : > { %5691 = vmatprep.mubr.msk.bf16.mxu0 %vm916_vm3, %v7038_v57 }
  0xe2   : > { %5692 = vmatmul.mubr.msk.bf16.gmra.mrb[28].mxu0 %vm916_vm3, %v7047_v62 }
  0xe3   : > { %5703 = vmatprep.mubr.msk.bf16.mxu0 %vm916_vm3, %v6625_v52  ;;  %v6402_v52 = vld [vmem:[%s8400_s1 + $0x98] sm:$0xff]  }
  0xea   : > { %5704 = vmatmul.mubr.msk.bf16.vlgmr.msra.gmra.mrb[0].mxu0 %vm916_vm3, %v6616_v45 }
  0xeb   : > { %5736 = vmatpush3.bf16.msra.mxu0 %v6399_v0  ;;  %5707 = vmatprep.mubr.msk.bf16.mxu0 %vm916_vm3, %v6631_v58  ;;  %v6406_v0 = vld [vmem:[%s8400_s1 + $0xa0] sm:$0xff]  }
  0xec   : > { %5737 = vmatprep.subr.bf16.mxu0 %v6400_v16 }
  0xef   : > { %5738 = vmatpush3.bf16.msra.mxu0 %v6400_v16  ;;  %v641_v16 = vrot.slane %v639_v5, 3 }
  0xf0   : > { %5739 = vmatprep.subr.bf16.mxu0 %v6401_v35 }
  0xf2   : > { %5708 = vmatmul.mubr.msk.bf16.gmra.mrb[4].mxu0 %vm916_vm3, %v6665_v32 }
  0xf3   : > { %5711 = vmatprep.mubr.msk.bf16.mxu0 %vm916_vm3, %v6684_v56  ;;  %5740 = vmatpush3.bf16.msra.mxu0 %v6401_v35  ;;  %v1916_v35 = vshll.u32 %v7097_v34, 16 }
  0xf4   : > { %5741 = vmatprep.subr.bf16.mxu0 %v6402_v52 }
  0xf5   : > { %v1918_v55 = vrot.slane %v1916_v35, 1 }
  0xf7   : > { %5742 = vmatpush3.bf16.msra.mxu0 %v6402_v52  ;;  %v692_v52 = vsel %vm6595_vm2, %v526_v40, %v641_v16  ;;  %v6411_v40 = vld [vmem:[%s8400_s1 + $0xc8] sm:$0xff]  }
  0xf8   : > { %5775 = vmatprep.subr.bf16.mxu0 %v6406_v0  ;;  %v1921_v38 = vshll.u32 %v692_v52, 16 }
  0xfa   : > { %5712 = vmatmul.mubr.msk.bf16.gmra.mrb[8].mxu0 %vm916_vm3, %v6709_v13  ;;  %v1923_v43 = vrot.slane %v1921_v38, 1 }
  0xfb   : > { %5715 = vmatprep.mubr.msk.bf16.mxu0 %vm916_vm3, %v6728_v47 }
 0x102   : > { %5716 = vmatmul.mubr.msk.bf16.gmra.mrb[12].mxu0 %vm916_vm3, %v6746_v6 }
 0x103   : > { %5719 = vmatprep.mubr.msk.bf16.mxu0 %vm916_vm3, %v6764_v36 }
 0x10a   : > { %5720 = vmatmul.mubr.msk.bf16.gmra.mrb[16].mxu0 %vm916_vm3, %v6788_v17 }
 0x10b   : > { %5723 = vmatprep.mubr.msk.bf16.mxu0 %vm916_vm3, %v6800_v42 }
 0x112   : > { %5724 = vmatmul.mubr.msk.bf16.gmra.mrb[20].mxu0 %vm916_vm3, %v6818_v33 }
 0x113   : > { %5727 = vmatprep.mubr.msk.bf16.mxu0 %vm916_vm3, %v6836_v3 }
 0x11a   : > { %5728 = vmatmul.mubr.msk.bf16.gmra.mrb[24].mxu0 %vm916_vm3, %v6852_v24 }
 0x11b   : > { %5731 = vmatprep.mubr.msk.bf16.mxu0 %vm916_vm3, %v6868_v28 }
 0x122   : > { %5732 = vmatmul.mubr.msk.bf16.gmra.mrb[28].mxu0 %vm916_vm3, %v7097_v34 }
 0x123   : > { %5743 = vmatprep.mubr.msk.bf16.mxu0 %vm916_vm3, %v6653_v18  ;;  %v6409_v18 = vld [vmem:[%s8400_s1 + $0xb8] sm:$0xff]  }
 0x12a   : > { %5744 = vmatmul.mubr.msk.bf16.vlgmr.msra.gmra.mrb[0].mxu0 %vm916_vm3, %v6646_v12 }
 0x12b   : > { %5776 = vmatpush3.bf16.msra.mxu0 %v6406_v0  ;;  %5747 = vmatprep.mubr.msk.bf16.mxu0 %vm916_vm3, %v6661_v26  ;;  %v1914_v0 = vshrl.u32 %v7097_v34, 16 }
 0x12c   : > { %5777 = vmatprep.subr.bf16.mxu0 %v6407_v60 }
 0x12d   : > { %v1919_v48 = vor.u32 %v1918_v55, %v1914_v0 }
 0x12f   : > { %5778 = vmatpush3.bf16.msra.mxu0 %v6407_v60  ;;  %v7148_v9 = vsel %vm702_vm4, %v1919_v48, %v1923_v43  ;;  %v2157_v60 = vrot.slane %v692_v52, 1 }
 0x130   : > { %5779 = vmatprep.subr.bf16.mxu0 %v6408_v53 }
 0x132   : > { %5748 = vmatmul.mubr.msk.bf16.gmra.mrb[4].mxu0 %vm916_vm3, %v6703_v8 }
 0x133   : > { %5751 = vmatprep.mubr.msk.bf16.mxu0 %vm916_vm3, %v6721_v29  ;;  %5780 = vmatpush3.bf16.msra.mxu0 %v6408_v53  ;;  %v7196_v53 = vsel %vm1368_vm5, %v2156_v10, %v2157_v60 }
 0x134   : > { %5781 = vmatprep.subr.bf16.mxu0 %v6409_v18 }
 0x137   : > { %5782 = vmatpush3.bf16.msra.mxu0 %v6409_v18  ;;  %v6415_v18 = vld [vmem:[%s8400_s1 + $0xe8] sm:$0xff]  }
 0x138   : > { %5815 = vmatprep.subr.bf16.mxu0 %v6410_v31 }
 0x13a   : > { %5752 = vmatmul.mubr.msk.bf16.gmra.mrb[8].mxu0 %vm916_vm3, %v6735_v51 }
 0x13b   : > { %5755 = vmatprep.mubr.msk.bf16.mxu0 %vm916_vm3, %v6758_v27 }
 0x142   : > { %5756 = vmatmul.mubr.msk.bf16.gmra.mrb[12].mxu0 %vm916_vm3, %v6773_v54 }
 0x143   : > { %5759 = vmatprep.mubr.msk.bf16.mxu0 %vm916_vm3, %v6792_v23 }
 0x14a   : > { %5760 = vmatmul.mubr.msk.bf16.gmra.mrb[16].mxu0 %vm916_vm3, %v6812_v4 }
 0x14b   : > { %5763 = vmatprep.mubr.msk.bf16.mxu0 %vm916_vm3, %v6825_v41 }
 0x152   : > { %5764 = vmatmul.mubr.msk.bf16.gmra.mrb[20].mxu0 %vm916_vm3, %v6846_v1 }
 0x153   : > { %5767 = vmatprep.mubr.msk.bf16.mxu0 %vm916_vm3, %v6862_v20 }
 0x15a   : > { %5768 = vmatmul.mubr.msk.bf16.gmra.mrb[24].mxu0 %vm916_vm3, %v6875_v39 }
 0x15b   : > { %5771 = vmatprep.mubr.msk.bf16.mxu0 %vm916_vm3, %v6883_v50 }
 0x162   : > { %5772 = vmatmul.mubr.msk.bf16.gmra.mrb[28].mxu0 %vm916_vm3, %v7148_v9 }
 0x163   : > { %5783 = vmatprep.mubr.msk.bf16.mxu0 %vm916_vm3, %v6942_v19  ;;  %v6413_v19 = vld [vmem:[%s8400_s1 + $0xd8] sm:$0xff]  }
 0x16a   : > { %5784 = vmatmul.mubr.msk.bf16.vlgmr.msra.gmra.mrb[0].mxu0 %vm916_vm3, %v6933_v2 }
 0x16b   : > { %5816 = vmatpush3.bf16.msra.mxu0 %v6410_v31  ;;  %5787 = vmatprep.mubr.msk.bf16.mxu0 %vm916_vm3, %v6959_v49  ;;  %v6416_v31 = vld [vmem:[%s8400_s1 + $0xf0] sm:$0xff]  }
 0x16c   : > { %5817 = vmatprep.subr.bf16.mxu0 %v6411_v40 }
 0x16f   : > { %5818 = vmatpush3.bf16.msra.mxu0 %v6411_v40 }
 0x170   : > { %5819 = vmatprep.subr.bf16.mxu0 %v6412_v46 }
 0x172   : > { %5788 = vmatmul.mubr.msk.bf16.gmra.mrb[4].mxu0 %vm916_vm3, %v6962_v21 }
 0x173   : > { %5791 = vmatprep.mubr.msk.bf16.mxu0 %vm916_vm3, %v6979_v61  ;;  %5820 = vmatpush3.bf16.msra.mxu0 %v6412_v46 }
 0x174   : > { %5821 = vmatprep.subr.bf16.mxu0 %v6413_v19 }
 0x177   : > { %5822 = vmatpush3.bf16.msra.mxu0 %v6413_v19 }
 0x178   : > { %5855 = vmatprep.subr.bf16.mxu0 %v6414_v44 }
 0x17a   : > { %5792 = vmatmul.mubr.msk.bf16.gmra.mrb[8].mxu0 %vm916_vm3, %v6982_v7 }
 0x17b   : > { %5795 = vmatprep.mubr.msk.bf16.mxu0 %vm916_vm3, %v6993_v11 }
 0x182   : > { %5796 = vmatmul.mubr.msk.bf16.gmra.mrb[12].mxu0 %vm916_vm3, %v6996_v22 }
 0x183   : > { %5799 = vmatprep.mubr.msk.bf16.mxu0 %vm916_vm3, %v7007_v25 }
 0x18a   : > { %5800 = vmatmul.mubr.msk.bf16.gmra.mrb[16].mxu0 %vm916_vm3, %v7010_v15 }
 0x18b   : > { %5803 = vmatprep.mubr.msk.bf16.mxu0 %vm916_vm3, %v7021_v63 }
 0x192   : > { %5804 = vmatmul.mubr.msk.bf16.gmra.mrb[20].mxu0 %vm916_vm3, %v7024_v37 }
 0x193   : > { %5807 = vmatprep.mubr.msk.bf16.mxu0 %vm916_vm3, %v7035_v59 }
 0x19a   : > { %5808 = vmatmul.mubr.msk.bf16.gmra.mrb[24].mxu0 %vm916_vm3, %v7038_v57 }
 0x19b   : > { %5811 = vmatprep.mubr.msk.bf16.mxu0 %vm916_vm3, %v7047_v62 }
 0x1a2   : > { %5812 = vmatmul.mubr.msk.bf16.gmra.mrb[28].mxu0 %vm916_vm3, %v7196_v53 }
 0x1a3   : > { %5823 = vmatprep.mubr.msk.bf16.mxu0 %vm916_vm3, %v6616_v45  ;;  %v6417_v45 = vld [vmem:[%s8400_s1 + $0xf8] sm:$0xff]  }
 0x1aa   : > { %5824 = vmatmul.mubr.msk.bf16.vlgmr.msra.gmra.mrb[0].mxu0 %vm916_vm3, %v6631_v58  ;;  %v6418_v58 = vld [vmem:[%s8400_s1 + $0x100] sm:$0xff]  }
 0x1ab   : > { %5856 = vmatpush3.bf16.msra.mxu0 %v6414_v44  ;;  %5827 = vmatprep.mubr.msk.bf16.mxu0 %vm916_vm3, %v6665_v32  ;;  %v6419_v32 = vld [vmem:[%s8400_s1 + $0x108] sm:$0xff]  }
 0x1ac   : > { %5857 = vmatprep.subr.bf16.mxu0 %v6415_v18 }
 0x1af   : > { %5858 = vmatpush3.bf16.msra.mxu0 %v6415_v18 }
 0x1b0   : > { %5859 = vmatprep.subr.bf16.mxu0 %v6416_v31 }
 0x1b2   : > { %5828 = vmatmul.mubr.msk.bf16.gmra.mrb[4].mxu0 %vm916_vm3, %v6684_v56  ;;  %v6420_v56 = vld [vmem:[%s8400_s1 + $0x110] sm:$0xff]  }
 0x1b3   : > { %5831 = vmatprep.mubr.msk.bf16.mxu0 %vm916_vm3, %v6709_v13  ;;  %5860 = vmatpush3.bf16.msra.mxu0 %v6416_v31 }
 0x1b4   : > { %5861 = vmatprep.subr.bf16.mxu0 %v6417_v45 }
 0x1b7   : > { %5862 = vmatpush3.bf16.msra.mxu0 %v6417_v45 }
 0x1b8   : > { %5895 = vmatprep.subr.bf16.mxu0 %v6418_v58 }
 0x1ba   : > { %5832 = vmatmul.mubr.msk.bf16.gmra.mrb[8].mxu0 %vm916_vm3, %v6728_v47 }
 0x1bb   : > { %5835 = vmatprep.mubr.msk.bf16.mxu0 %vm916_vm3, %v6746_v6 }
 0x1c2   : > { %5836 = vmatmul.mubr.msk.bf16.gmra.mrb[12].mxu0 %vm916_vm3, %v6764_v36 }
 0x1c3   : > { %5839 = vmatprep.mubr.msk.bf16.mxu0 %vm916_vm3, %v6788_v17 }
 0x1ca   : > { %5840 = vmatmul.mubr.msk.bf16.gmra.mrb[16].mxu0 %vm916_vm3, %v6800_v42 }
 0x1cb   : > { %5843 = vmatprep.mubr.msk.bf16.mxu0 %vm916_vm3, %v6818_v33 }
 0x1d2   : > { %5844 = vmatmul.mubr.msk.bf16.gmra.mrb[20].mxu0 %vm916_vm3, %v6836_v3 }
 0x1d3   : > { %5847 = vmatprep.mubr.msk.bf16.mxu0 %vm916_vm3, %v6852_v24 }
 0x1da   : > { %5848 = vmatmul.mubr.msk.bf16.gmra.mrb[24].mxu0 %vm916_vm3, %v6868_v28 }
 0x1db   : > { %5851 = vmatprep.mubr.msk.bf16.mxu0 %vm916_vm3, %v7097_v34 }
 0x1e2   : > { %5852 = vmatmul.mubr.msk.bf16.gmra.mrb[28].mxu0 %vm916_vm3, %v6868_v28 }
 0x1e3   : > { %5863 = vmatprep.mubr.msk.bf16.mxu0 %vm916_vm3, %v6646_v12  ;;  %v6421_v12 = vld [vmem:[%s8400_s1 + $0x118] sm:$0xff]  }
 0x1ea   : > { %5864 = vmatmul.mubr.msk.bf16.vlgmr.msra.gmra.mrb[0].mxu0 %vm916_vm3, %v6661_v26  ;;  %v7320_v26 = vld [vmem:[%s8401_s2] ss:$0 sm:$0xff] }
 0x1eb   : > { %5896 = vmatpush3.bf16.msra.mxu0 %v6418_v58  ;;  %5867 = vmatprep.mubr.msk.bf16.mxu0 %vm916_vm3, %v6703_v8  ;;  %v7367_v58 = vld [vmem:[%s8402_s3 + $0x10] sm:$0xff]  }
 0x1ec   : > { %5897 = vmatprep.subr.bf16.mxu0 %v6419_v32  ;;  %5411 = vmatprep.mubr.msk.bf16.mxu1 %vm3739_vm10, %v7367_v58 }
 0x1ef   : > { %5898 = vmatpush3.bf16.msra.mxu0 %v6419_v32 }
 0x1f0   : > { %5899 = vmatprep.subr.bf16.mxu0 %v6420_v56 }
 0x1f2   : > { %5868 = vmatmul.mubr.msk.bf16.gmra.mrb[4].mxu0 %vm916_vm3, %v6721_v29 }
 0x1f3   : > { %5871 = vmatprep.mubr.msk.bf16.mxu0 %vm916_vm3, %v6735_v51  ;;  %5900 = vmatpush3.bf16.msra.mxu0 %v6420_v56 }
 0x1f4   : > { %5901 = vmatprep.subr.bf16.mxu0 %v6421_v12 }
 0x1f7   : > { %5902 = vmatpush3.bf16.msra.mxu0 %v6421_v12 }
 0x1fa   : > { %5872 = vmatmul.mubr.msk.bf16.gmra.mrb[8].mxu0 %vm916_vm3, %v6758_v27 }
 0x1fb   : > { %5875 = vmatprep.mubr.msk.bf16.mxu0 %vm916_vm3, %v6773_v54 }
 0x202   : > { %5876 = vmatmul.mubr.msk.bf16.gmra.mrb[12].mxu0 %vm916_vm3, %v6792_v23 }
 0x203   : > { %5879 = vmatprep.mubr.msk.bf16.mxu0 %vm916_vm3, %v6812_v4 }
 0x20a   : > { %5880 = vmatmul.mubr.msk.bf16.gmra.mrb[16].mxu0 %vm916_vm3, %v6825_v41 }
 0x20b   : > { %5883 = vmatprep.mubr.msk.bf16.mxu0 %vm916_vm3, %v6846_v1 }
 0x212   : > { %5884 = vmatmul.mubr.msk.bf16.gmra.mrb[20].mxu0 %vm916_vm3, %v6862_v20 }
 0x213   : > { %5887 = vmatprep.mubr.msk.bf16.mxu0 %vm916_vm3, %v6875_v39 }
 0x21a   : > { %5888 = vmatmul.mubr.msk.bf16.gmra.mrb[24].mxu0 %vm916_vm3, %v6883_v50 }
 0x21b   : > { %5891 = vmatprep.mubr.msk.bf16.mxu0 %vm916_vm3, %v7148_v9 }
 0x222   : > { %5892 = vmatmul.mubr.msk.bf16.gmra.mrb[28].mxu0 %vm916_vm3, %v6883_v50 }
 0x223   : > { %5903 = vmatprep.mubr.msk.bf16.mxu0 %vm916_vm3, %v6933_v2 }
 0x22a   : > { %5904 = vmatmul.mubr.msk.bf16.vlgmr.msra.gmra.mrb[0].mxu0 %vm916_vm3, %v6959_v49 }
 0x22b   : > { %5907 = vmatprep.mubr.msk.bf16.mxu0 %vm916_vm3, %v6962_v21 }
 0x232   : > { %5908 = vmatmul.mubr.msk.bf16.gmra.mrb[4].mxu0 %vm916_vm3, %v6979_v61 }
 0x233   : > { %5911 = vmatprep.mubr.msk.bf16.mxu0 %vm916_vm3, %v6982_v7 }
 0x23a   : > { %5912 = vmatmul.mubr.msk.bf16.gmra.mrb[8].mxu0 %vm916_vm3, %v6993_v11 }
 0x23b   : > { %5915 = vmatprep.mubr.msk.bf16.mxu0 %vm916_vm3, %v6996_v22 }
 0x242   : > { %5916 = vmatmul.mubr.msk.bf16.gmra.mrb[12].mxu0 %vm916_vm3, %v7007_v25 }
 0x243   : > { %5919 = vmatprep.mubr.msk.bf16.mxu0 %vm916_vm3, %v7010_v15 }
 0x24a   : > { %5920 = vmatmul.mubr.msk.bf16.gmra.mrb[16].mxu0 %vm916_vm3, %v7021_v63 }
 0x24b   : > { %5923 = vmatprep.mubr.msk.bf16.mxu0 %vm916_vm3, %v7024_v37 }
 0x252   : > { %5924 = vmatmul.mubr.msk.bf16.gmra.mrb[20].mxu0 %vm916_vm3, %v7035_v59 }
 0x253   : > { %5927 = vmatprep.mubr.msk.bf16.mxu0 %vm916_vm3, %v7038_v57 }
 0x25a   : > { %5928 = vmatmul.mubr.msk.bf16.gmra.mrb[24].mxu0 %vm916_vm3, %v7047_v62 }
 0x25b   : > { %5931 = vmatprep.mubr.msk.bf16.mxu0 %vm916_vm3, %v7196_v53 }
 0x262   : > { %5932 = vmatmul.mubr.msk.bf16.gmra.mrb[28].mxu0 %vm916_vm3, %v7047_v62 }
 0x2fd   : > { %v5905_v8 = vpop.f32.mrb[0].mxu0 }
 0x2fe   : > { %v3074_v13 = vadd.f32 %v5905_v8, %v7320_v26  ;;  %v2907_v29 = vpop.f32.mrb[1].mxu0 }
 0x2ff   : > { %v7324_v47 = vadd.f32 %v7320_v26, %v2907_v29  ;;  %v5906_v51 = vpop.f32.mrb[2].mxu0 }
 0x300   : > { %v3138_v6 = vmin.f32 %v3074_v13, 0.0  ;;  %v3075_v27 = vadd.f32 %v5906_v51, %v7320_v26  ;;  %v2910_v36 = vpop.f32.mrb[3].mxu0  ;;  %vm3106_vm6 = vcmp.gt.f32.partialorder %v3074_v13, 0.0 }
 0x301   : > { %v3136_v54 = vmin.f32 %v7324_v47, 0.0  ;;  %v3073_v17 = vadd.f32 %v7320_v26, %v2910_v36  ;;  %vm3104_vm7 = vcmp.gt.f32.partialorder %v7324_v47, 0.0 }
 0x302   : > { %v3172_v23 = vmul.f32 1.442695, %v3138_v6  ;;  %v3139_v42 = vmin.f32 %v3075_v27, 0.0  ;;  %vm3107_vm8 = vcmp.gt.f32.partialorder %v3075_v27, 0.0 }
 0x303   : > { %v3168_v4 = vmul.f32 1.442695, %v3136_v54  ;;  %v3137_v33 = vmin.f32 %v3073_v17, 0.0  ;;  %vm3105_vm9 = vcmp.gt.f32.partialorder %v3073_v17, 0.0 }
 0x304   : > { %6440 = vpow2.f32 %v3172_v23  ;;  %v3174_v41 = vmul.f32 1.442695, %v3139_v42 }
 0x305   : > { %6442 = vpow2.f32 %v3168_v4  ;;  %v3170_v3 = vmul.f32 1.442695, %v3137_v33  ;;  %v5909_v1 = vpop.f32.mrb[4].mxu0 }
 0x306   : > { %6444 = vpow2.f32 %v3174_v41  ;;  %v7330_v24 = vadd.f32 %v5909_v1, %v7320_v26  ;;  %v2923_v20 = vpop.f32.mrb[5].mxu0 }
 0x307   : > { %6446 = vpow2.f32 %v3170_v3  ;;  %v7333_v28 = vadd.f32 %v7320_v26, %v2923_v20  ;;  %v5910_v39 = vpop.f32.mrb[6].mxu0 }
 0x308   : > { %v3142_v50 = vmin.f32 %v7330_v24, 0.0  ;;  %v7337_v2 = vadd.f32 %v5910_v39, %v7320_v26  ;;  %v2926_v49 = vpop.f32.mrb[7].mxu0  ;;  %vm3110_vm11 = vcmp.gt.f32.partialorder %v7330_v24, 0.0 }
 0x309   : > { %v3140_v21 = vmin.f32 %v7333_v28, 0.0  ;;  %v7341_v61 = vadd.f32 %v7320_v26, %v2926_v49  ;;  %vm3108_vm12 = vcmp.gt.f32.partialorder %v7333_v28, 0.0 }
 0x30a   : > { %v3180_v7 = vmul.f32 1.442695, %v3142_v50  ;;  %v3143_v11 = vmin.f32 %v7337_v2, 0.0  ;;  %vm3111_vm13 = vcmp.gt.f32.partialorder %v7337_v2, 0.0 }
 0x30b   : > { %v3176_v22 = vmul.f32 1.442695, %v3140_v21  ;;  %v3141_v25 = vmin.f32 %v7341_v61, 0.0  ;;  %vm3109_vm14 = vcmp.gt.f32.partialorder %v7341_v61, 0.0 }
 0x30c   : > { %6448 = vpow2.f32 %v3180_v7  ;;  %v3182_v15 = vmul.f32 1.442695, %v3143_v11 }
 0x30d   : > { %6450 = vpow2.f32 %v3176_v22  ;;  %v3178_v63 = vmul.f32 1.442695, %v3141_v25  ;;  %v5913_v37 = vpop.f32.mrb[8].mxu0 }
 0x30e   : > { %v6441_v59 = vpop.eup %6440  ;;  %6452 = vpow2.f32 %v3182_v15  ;;  %v7346_v57 = vadd.f32 %v5913_v37, %v7320_v26  ;;  %v2939_v62 = vpop.f32.mrb[9].mxu0 }
 0x30f   : > { %v6443_v34 = vpop.eup %6442  ;;  %v5105_v14 = vadd.f32 -1.0, %v6441_v59  ;;  %6454 = vpow2.f32 %v3178_v63  ;;  %v7349_v5 = vadd.f32 %v7320_v26, %v2939_v62  ;;  %v5914_v16 = vpop.f32.mrb[10].mxu0 }
 0x310   : > { %v6445_v35 = vpop.eup %6444  ;;  %v5103_v52 = vadd.f32 -1.0, %v6443_v34  ;;  %v3146_v0 = vmin.f32 %v7346_v57, 0.0  ;;  %v7353_v55 = vadd.f32 %v5914_v16, %v7320_v26  ;;  %v2942_v38 = vpop.f32.mrb[11].mxu0  ;;  %vm3114_vm15 = vcmp.gt.f32.partialorder %v7346_v57, 0.0 }
 0x311   : > { %v6447_v48 = vpop.eup %6446  ;;  %v5106_v43 = vadd.f32 -1.0, %v6445_v35  ;;  %v3144_v9 = vmin.f32 %v7349_v5, 0.0  ;;  %v3266_v40 = vsel %vm3106_vm6, %v3074_v13, %v5105_v14  ;;  %v7359_v53 = vadd.f32 %v7320_v26, %v2942_v38 }
 0x312   : > { %v5104_v46 = vadd.f32 -1.0, %v6447_v48  ;;  %v3188_v19 = vmul.f32 1.442695, %v3146_v0  ;;  %v3147_v60 = vmin.f32 %v7353_v55, 0.0  ;;  %v3264_v18 = vsel %vm3104_vm7, %v7324_v47, %v5103_v52 }
 0x313   : > { %v3267_v44 = vsel %vm3107_vm8, %v3075_v27, %v5106_v43  ;;  %v3184_v10 = vmul.f32 1.442695, %v3144_v9  ;;  %v3145_v13 = vmin.f32 %v7359_v53, 0.0  ;;  %vm3112_vm0 = vcmp.gt.f32.partialorder %v7349_v5, 0.0 }
 0x314   : > { %v7362_v31 = vpack.c.bf16 %v3267_v44, %v3266_v40  ;;  %v3265_v45 = vsel %vm3105_vm9, %v3073_v17, %v5104_v46  ;;  %6456 = vpow2.f32 %v3188_v19  ;;  %v3190_v56 = vmul.f32 1.442695, %v3147_v60 }
 0x315   : > { %v7369_v32 = vpack.c.bf16 %v3265_v45, %v3264_v18  ;;  %v5917_v12 = vpop.f32.mrb[12].mxu0  ;;  %6458 = vpow2.f32 %v3184_v10  ;;  %v3186_v17 = vmul.f32 1.442695, %v3145_v13  ;;  %vm3115_vm1 = vcmp.gt.f32.partialorder %v7353_v55, 0.0 }
 0x316   : > { %v6449_v8 = vpop.eup %6448  ;;  %v2955_v29 = vpop.f32.mrb[13].mxu0  ;;  %6460 = vpow2.f32 %v3190_v56  ;;  %v7375_v6 = vadd.f32 %v5917_v12, %v7320_v26  ;;  %v3313_v0 = vshrl.u32 %v7362_v31, 16  ;;  %vm3113_vm3 = vcmp.gt.f32.partialorder %v7359_v53, 0.0 }
 0x317   : > { %v6451_v47 = vpop.eup %6450  ;;  %v5109_v51 = vadd.f32 -1.0, %v6449_v8  ;;  %v5918_v27 = vpop.f32.mrb[14].mxu0  ;;  %6462 = vpow2.f32 %v3186_v17  ;;  %v7389_v49 = vadd.f32 %v7320_v26, %v2955_v29  ;;  %v3316_v44 = vshrl.u32 %v7369_v32, 16 }
 0x318   : > { %v6453_v36 = vpop.eup %6452  ;;  %v5107_v54 = vadd.f32 -1.0, %v6451_v47  ;;  %v2958_v23 = vpop.f32.mrb[15].mxu0  ;;  %v3150_v1 = vmin.f32 %v7375_v6, 0.0  ;;  %v7395_v25 = vadd.f32 %v5918_v27, %v7320_v26  ;;  %vm3118_vm6 = vcmp.gt.f32.partialorder %v7375_v6, 0.0 }
 0x319   : > { %v6455_v42 = vpop.eup %6454  ;;  %v5110_v4 = vadd.f32 -1.0, %v6453_v36  ;;  %v3270_v41 = vsel %vm3110_vm11, %v7330_v24, %v5109_v51  ;;  %v7402_v16 = vadd.f32 %v7320_v26, %v2958_v23  ;;  %v7431_v51 = vrot.slane %v3313_v0, 7 }
 0x31a   : > { %v5108_v33 = vadd.f32 -1.0, %v6455_v42  ;;  %v3268_v20 = vsel %vm3108_vm12, %v7333_v28, %v5107_v54  ;;  %v3196_v24 = vmul.f32 1.442695, %v3150_v1  ;;  %v3151_v14 = vmin.f32 %v7395_v25, 0.0 }
 0x31b   : > { %v3271_v3 = vsel %vm3111_vm13, %v7337_v2, %v5110_v4  ;;  %v3148_v2 = vmin.f32 %v7389_v49, 0.0  ;;  %v3149_v10 = vmin.f32 %v7402_v16, 0.0  ;;  %v3377_v54 = vshll.u32 %v7362_v31, 16 }
 0x31c   : > { %v7385_v39 = vpack.c.bf16 %v3271_v3, %v3270_v41  ;;  %v3269_v50 = vsel %vm3109_vm14, %v7341_v61, %v5108_v33  ;;  %6464 = vpow2.f32 %v3196_v24  ;;  %v3198_v40 = vmul.f32 1.442695, %v3151_v14 }
 0x31d   : > { %v7391_v21 = vpack.c.bf16 %v3269_v50, %v3268_v20  ;;  %v5921_v7 = vpop.f32.mrb[16].mxu0  ;;  %v3192_v62 = vmul.f32 1.442695, %v3148_v2  ;;  %v3194_v8 = vmul.f32 1.442695, %v3149_v10  ;;  %v3381_v23 = vshll.u32 %v7369_v32, 16 }
 0x31e   : > { %v6457_v11 = vpop.eup %6456  ;;  %v2971_v22 = vpop.f32.mrb[17].mxu0  ;;  %v7405_v35 = vadd.f32 %v5921_v7, %v7320_v26  ;;  %v3379_v33 = vor.u32 %v3377_v54, %v7431_v51  ;;  %vm3116_vm7 = vcmp.gt.f32.partialorder %v7389_v49, 0.0  ;;  %vm3119_vm8 = vcmp.gt.f32.partialorder %v7395_v25, 0.0 }
 0x31f   : > { %v5922_v15 = vpop.f32.mrb[18].mxu0  ;;  %v6459_v28 = vpop.eup %6458  ;;  %v5113_v63 = vadd.f32 -1.0, %v6457_v11  ;;  %v7414_v46 = vadd.f32 %v7320_v26, %v2971_v22  ;;  %6466 = vpow2.f32 %v3192_v62  ;;  %vm3117_vm9 = vcmp.gt.f32.partialorder %v7402_v16, 0.0 }
 0x320   : > { %v2974_v37 = vpop.f32.mrb[19].mxu0  ;;  %v6461_v59 = vpop.eup %6460  ;;  %v5111_v34 = vadd.f32 -1.0, %v6459_v28  ;;  %v3154_v60 = vmin.f32 %v7405_v35, 0.0  ;;  %6468 = vpow2.f32 %v3198_v40  ;;  %v7424_v45 = vadd.f32 %v5922_v15, %v7320_v26 }
 0x321   : > { %v5114_v61 = vadd.f32 -1.0, %v6461_v59  ;;  %v6463_v52 = vpop.eup %6462  ;;  %v3274_v38 = vsel %vm3114_vm15, %v7346_v57, %v5113_v63  ;;  %v3152_v47 = vmin.f32 %v7414_v46, 0.0  ;;  %6470 = vpow2.f32 %v3194_v8 }
 0x322   : > { %v5112_v9 = vadd.f32 -1.0, %v6463_v52  ;;  %v3204_v13 = vmul.f32 1.442695, %v3154_v60  ;;  %v3155_v27 = vmin.f32 %v7424_v45, 0.0  ;;  %v7440_v17 = vadd.f32 %v7320_v26, %v2974_v37 }
 0x323   : > { %v3275_v48 = vsel %vm3115_vm1, %v7353_v55, %v5114_v61  ;;  %v3272_v55 = vsel %vm3112_vm0, %v7349_v5, %v5111_v34  ;;  %v7435_v5 = vrot.slane %v3316_v44, 7  ;;  %vm3122_vm11 = vcmp.gt.f32.partialorder %v7405_v35, 0.0 }
 0x324   : > { %v7411_v43 = vpack.c.bf16 %v3275_v48, %v3274_v38  ;;  %v3273_v18 = vsel %vm3113_vm3, %v7359_v53, %v5112_v9  ;;  %6472 = vpow2.f32 %v3204_v13  ;;  %v3200_v53 = vmul.f32 1.442695, %v3152_v47 }
 0x325   : > { %v5925_v19 = vpop.f32.mrb[20].mxu0  ;;  %v7426_v12 = vpack.c.bf16 %v3273_v18, %v3272_v55  ;;  %v3206_v42 = vmul.f32 1.442695, %v3155_v27  ;;  %v3153_v41 = vmin.f32 %v7440_v17, 0.0  ;;  %v3383_v20 = vor.u32 %v3381_v23, %v7435_v5 }
 0x326   : > { %v2987_v57 = vpop.f32.mrb[21].mxu0  ;;  %v6465_v36 = vpop.eup %6464  ;;  %6474 = vpow2.f32 %v3200_v53  ;;  %v7446_v3 = vadd.f32 %v5925_v19, %v7320_v26  ;;  %vm3123_vm12 = vcmp.gt.f32.partialorder %v7424_v45, 0.0  ;;  %vm3120_vm13 = vcmp.gt.f32.partialorder %v7414_v46, 0.0 }
 0x327   : > { %v5926_v56 = vpop.f32.mrb[22].mxu0  ;;  %6476 = vpow2.f32 %v3206_v42  ;;  %v7450_v50 = vadd.f32 %v7320_v26, %v2987_v57  ;;  %v5117_v2 = vadd.f32 -1.0, %v6465_v36  ;;  %v3202_v22 = vmul.f32 1.442695, %v3153_v41 }
 0x328   : > { %v2990_v29 = vpop.f32.mrb[23].mxu0  ;;  %v7453_v7 = vadd.f32 %v5926_v56, %v7320_v26  ;;  %v3158_v15 = vmin.f32 %v7446_v3, 0.0  ;;  %v7495_v41 = vrot.slane %v3377_v54, 7  ;;  %vm3121_vm14 = vcmp.gt.f32.partialorder %v7440_v17, 0.0 }
 0x329   : > { %v6467_v24 = vpop.eup %6466  ;;  %v3156_v37 = vmin.f32 %v7450_v50, 0.0  ;;  %6478 = vpow2.f32 %v3202_v22  ;;  %v7464_v34 = vadd.f32 %v7320_v26, %v2990_v29  ;;  %v3278_v40 = vsel %vm3118_vm6, %v7375_v6, %v5117_v2 }
 0x32a   : > { %v6469_v63 = vpop.eup %6468  ;;  %v3159_v59 = vmin.f32 %v7453_v7, 0.0  ;;  %v3212_v62 = vmul.f32 1.442695, %v3158_v15  ;;  %v5115_v14 = vadd.f32 -1.0, %v6467_v24  ;;  %vm3126_vm15 = vcmp.gt.f32.partialorder %v7446_v3, 0.0 }
 0x32b   : > { %v5118_v61 = vadd.f32 -1.0, %v6469_v63  ;;  %v3208_v52 = vmul.f32 1.442695, %v3156_v37  ;;  %v6471_v9 = vpop.eup %6470  ;;  %v3157_v10 = vmin.f32 %v7464_v34, 0.0  ;;  %vm3124_vm0 = vcmp.gt.f32.partialorder %v7450_v50, 0.0 }
 0x32c   : > { %v3214_v38 = vmul.f32 1.442695, %v3159_v59  ;;  %6480 = vpow2.f32 %v3212_v62  ;;  %v5116_v55 = vadd.f32 -1.0, %v6471_v9  ;;  %v3276_v13 = vsel %vm3116_vm7, %v7389_v49, %v5115_v14 }
 0x32d   : > { %v5929_v4 = vpop.f32.mrb[24].mxu0  ;;  %v3279_v19 = vsel %vm3119_vm8, %v7395_v25, %v5118_v61  ;;  %6482 = vpow2.f32 %v3208_v52  ;;  %v3210_v8 = vmul.f32 1.442695, %v3157_v10  ;;  %v7504_v49 = vsel %vm6595_vm2, %v3313_v0, %v3379_v33 }
 0x32e   : > { %v3003_v1 = vpop.f32.mrb[25].mxu0  ;;  %v7467_v48 = vadd.f32 %v5929_v4, %v7320_v26  ;;  %v6473_v60 = vpop.eup %6472  ;;  %v7474_v57 = vpack.c.bf16 %v3279_v19, %v3278_v40  ;;  %6484 = vpow2.f32 %v3214_v38  ;;  %v3277_v29 = vsel %vm3117_vm9, %v7402_v16, %v5116_v55 }
 0x32f   : > { %v5930_v11 = vpop.f32.mrb[26].mxu0  ;;  %v7477_v18 = vadd.f32 %v7320_v26, %v3003_v1  ;;  %v7491_v27 = vpack.c.bf16 %v3277_v29, %v3276_v13  ;;  %v5121_v36 = vadd.f32 -1.0, %v6473_v60  ;;  %6486 = vpow2.f32 %v3210_v8 }
 0x330   : > { %v7457_v28 = vpop.f32.mrb[27].mxu0  ;;  %v3162_v6 = vmin.f32 %v7467_v48, 0.0  ;;  %v6475_v53 = vpop.eup %6474  ;;  %v7497_v1 = vrot.slane %v3381_v23, 7  ;;  %v7510_v16 = vsel %vm6595_vm2, %v3316_v44, %v3383_v20  ;;  %v7515_v23 = vadd.f32 %v5930_v11, %v7320_v26 }
 0x331   : > { %v6477_v4 = vpop.eup %6476  ;;  %v3160_v24 = vmin.f32 %v7477_v18, 0.0  ;;  %v5119_v54 = vadd.f32 -1.0, %v6475_v53  ;;  %v3322_v0 = vshrl.u32 %v7385_v39, 16  ;;  %v3319_v33 = vshrl.u32 %v7391_v21, 16 }
 0x332   : > { %v5122_v2 = vadd.f32 -1.0, %v6477_v4  ;;  %v3220_v22 = vmul.f32 1.442695, %v3162_v6  ;;  %v3282_v32 = vsel %vm3122_vm11, %v7405_v35, %v5121_v36  ;;  %v3334_v59 = vshrl.u32 %v7474_v57, 16 }
 0x333   : > { %v6479_v31 = vpop.eup %6478  ;;  %v3216_v63 = vmul.f32 1.442695, %v3160_v24  ;;  %v3163_v11 = vmin.f32 %v7515_v23, 0.0  ;;  %v3280_v62 = vsel %vm3120_vm13, %v7414_v46, %v5119_v54  ;;  %v7531_v14 = vadd.f32 %v7320_v26, %v7457_v28 }
 0x334   : > { %v3283_v44 = vsel %vm3123_vm12, %v7424_v45, %v5122_v2  ;;  %v5120_v15 = vadd.f32 -1.0, %v6479_v31  ;;  %6488 = vpow2.f32 %v3220_v22  ;;  %vm3127_vm1 = vcmp.gt.f32.partialorder %v7453_v7, 0.0 }
 0x335   : > { %v7479_v56 = vpop.f32.mrb[28].mxu0  ;;  %v7522_v20 = vpack.c.bf16 %v3283_v44, %v3282_v32  ;;  %v3222_v9 = vmul.f32 1.442695, %v3163_v11  ;;  %6490 = vpow2.f32 %v3216_v63  ;;  %vm3125_vm3 = vcmp.gt.f32.partialorder %v7464_v34, 0.0 }
 0x336   : > { %v7483_v25 = vpop.f32.mrb[29].mxu0  ;;  %v6481_v37 = vpop.eup %6480  ;;  %v3281_v35 = vsel %vm3121_vm14, %v7440_v17, %v5120_v15  ;;  %v3404_v17 = vrot.slane %v3334_v59, 7  ;;  %v3161_v8 = vmin.f32 %v7531_v14, 0.0  ;;  %v3405_v6 = vshll.u32 %v7474_v57, 16 }
 0x337   : > { %v7489_v47 = vpop.f32.mrb[30].mxu0  ;;  %v6483_v61 = vpop.eup %6482  ;;  %v5125_v45 = vadd.f32 -1.0, %v6481_v37  ;;  %v7533_v38 = vpack.c.bf16 %v3281_v35, %v3280_v62  ;;  %6492 = vpow2.f32 %v3222_v9  ;;  %v3340_v13 = vshrl.u32 %v7522_v20, 16 }
 0x338   : > { %v7493_v42 = vpop.f32.mrb[31].mxu0  ;;  %v6485_v52 = vpop.eup %6484  ;;  %v5123_v40 = vadd.f32 -1.0, %v6483_v61  ;;  %v7549_v53 = vadd.f32 %v7479_v56, %v7320_v26  ;;  %v7553_v36 = vrot.slane %v3319_v33, 7  ;;  %v3218_v4 = vmul.f32 1.442695, %v3161_v8 }
 0x339   : > { %v5126_v19 = vadd.f32 -1.0, %v6485_v52  ;;  %v6487_v46 = vpop.eup %6486  ;;  %v3337_v10 = vshrl.u32 %v7533_v38, 16  ;;  %v3286_v28 = vsel %vm3126_vm15, %v7446_v3, %v5125_v45  ;;  %v3407_v57 = vor.u32 %v3405_v6, %v3404_v17 }
 0x33a   : > { %v5124_v55 = vadd.f32 -1.0, %v6487_v46  ;;  %v3284_v3 = vsel %vm3124_vm0, %v7450_v50, %v5123_v40  ;;  %v7565_v56 = vadd.f32 %v7320_v26, %v7483_v25  ;;  %v3385_v22 = vshll.u32 %v7391_v21, 16 }
 0x33b   : > { %v3287_v60 = vsel %vm3127_vm1, %v7453_v7, %v5126_v19  ;;  %v7559_v24 = vrot.slane %v3337_v10, 7  ;;  %v3413_v54 = vshll.u32 %v7522_v20, 16  ;;  %6494 = vpow2.f32 %v3218_v4 }
 0x33c   : > { %v7545_v29 = vpack.c.bf16 %v3287_v60, %v3286_v28  ;;  %v3285_v7 = vsel %vm3125_vm3, %v7464_v34, %v5124_v55  ;;  %v3166_v31 = vmin.f32 %v7549_v53, 0.0  ;;  %v7572_v34 = vrot.slane %v3322_v0, 7 }
 0x33d   : > { %v7561_v2 = vpack.c.bf16 %v3285_v7, %v3284_v3  ;;  %v3389_v32 = vshll.u32 %v7385_v39, 16  ;;  %v7577_v44 = vrot.slane %v3340_v13, 7  ;;  %v3409_v25 = vshll.u32 %v7533_v38, 16 }
 0x33e   : > { %v6489_v50 = vpop.eup %6488  ;;  %v7583_v15 = vor.u32 %v3385_v22, %v7553_v36  ;;  %v3479_v63 = vrot.slane %v3405_v6, 7  ;;  %vm3130_vm6 = vcmp.gt.f32.partialorder %v7467_v48, 0.0  ;;  %v3228_v37 = vmul.f32 1.442695, %v3166_v31 }
 0x33f   : > { %v7588_v11 = vsel %vm6595_vm2, %v3334_v59, %v3407_v57  ;;  %v3411_v61 = vor.u32 %v3409_v25, %v7559_v24  ;;  %vm3131_vm7 = vcmp.gt.f32.partialorder %v7515_v23, 0.0  ;;  %v3164_v62 = vmin.f32 %v7565_v56, 0.0  ;;  %v6491_v35 = vpop.eup %6490 }
 0x340   : > { %v7593_v45 = vrot.slane %v3413_v54, 7  ;;  %v5129_v52 = vadd.f32 -1.0, %v6489_v50  ;;  %vm3128_vm8 = vcmp.gt.f32.partialorder %v7477_v18, 0.0  ;;  %vm3129_vm9 = vcmp.gt.f32.partialorder %v7531_v14, 0.0 }
 0x341   : > { %6496 = vpow2.f32 %v3228_v37  ;;  %v7599_v38 = vadd.f32 %v7489_v47, %v7320_v26  ;;  %v6493_v59 = vpop.eup %6492  ;;  %v3415_v9 = vor.u32 %v3413_v54, %v7577_v44  ;;  %v3480_v40 = vrot.slane %v3409_v25, 7 }
 0x342   : > { %v3224_v19 = vmul.f32 1.442695, %v3164_v62  ;;  %v7604_v46 = vadd.f32 %v7320_v26, %v7493_v42  ;;  %v3346_v28 = vshrl.u32 %v7545_v29, 16  ;;  %v5130_v60 = vadd.f32 -1.0, %v6493_v59 }
 0x343   : > { %v3167_v55 = vmin.f32 %v7599_v38, 0.0  ;;  %v7610_v8 = vsel %vm6595_vm2, %v3404_v17, %v3479_v63  ;;  %v7614_v47 = vsel %vm6595_vm2, %v3337_v10, %v3411_v61  ;;  %v3343_v6 = vshrl.u32 %v7561_v2, 16 }
 0x344   : > { %6498 = vpow2.f32 %v3224_v19  ;;  %v3165_v3 = vmin.f32 %v7604_v46, 0.0  ;;  %v3290_v26 = vsel %vm3130_vm6, %v7467_v48, %v5129_v52  ;;  %v3291_v42 = vsel %vm3131_vm7, %v7515_v23, %v5130_v60 }
 0x345   : > { %v3230_v7 = vmul.f32 1.442695, %v3167_v55  ;;  %v3631_v17 = vshll.u32 %v7588_v11, 16  ;;  %v5127_v4 = vadd.f32 -1.0, %v6491_v35  ;;  %v7625_v57 = vpack.c.bf16 %v3291_v42, %v3290_v26  ;;  %v6495_v31 = vpop.eup %6494 }
 0x346   : > { %v3226_v10 = vmul.f32 1.442695, %v3165_v3  ;;  %v3636_v54 = vshll.u32 %v7610_v8, 16  ;;  %v3629_v50 = vshrl.u32 %v7588_v11, 16  ;;  %v7633_v48 = vsel %vm6595_vm2, %v7431_v51, %v7495_v41 }
 0x347   : > { %6500 = vpow2.f32 %v3230_v7  ;;  %v3633_v25 = vrot.slane %v3631_v17, 1  ;;  %v7637_v23 = vrot.slane %v3346_v28, 7  ;;  %v7639_v63 = vrot.slane %v3343_v6, 7 }
 0x348   : > { %v5128_v37 = vadd.f32 -1.0, %v6495_v31  ;;  %6502 = vpow2.f32 %v3226_v10  ;;  %v3638_v62 = vrot.slane %v3636_v54, 1  ;;  %v3547_v35 = vshll.u32 %v7504_v49, 16 }
 0x349   : > { %v3634_v61 = vor.u32 %v3633_v25, %v3629_v50  ;;  %v3552_v52 = vshll.u32 %v7633_v48, 16  ;;  %v3417_v59 = vshll.u32 %v7561_v2, 16  ;;  %v3288_v51 = vsel %vm3128_vm8, %v7477_v18, %v5127_v4 }
 0x34a   : > { %v3289_v41 = vsel %vm3129_vm9, %v7531_v14, %v5128_v37  ;;  %v3545_v19 = vshrl.u32 %v7504_v49, 16  ;;  %v3549_v26 = vrot.slane %v3547_v35, 1  ;;  %v7659_v2 = vsel %vm6595_vm2, %v7559_v24, %v3480_v40 }
 0x34b   : > { %v6497_v60 = vpop.eup %6496  ;;  %v7651_v55 = vpack.c.bf16 %v3289_v41, %v3288_v51  ;;  %v7654_v3 = vsel %vm702_vm4, %v3634_v61, %v3638_v62  ;;  %v7665_v18 = vsel %vm6595_vm2, %v3340_v13, %v3415_v9  ;;  %v3421_v14 = vshll.u32 %v7545_v29, 16 }
 0x34c   : > { %8408 = vst [vmem:[#allocation2_spill] sm:$0xff] %v7654_v3  ;;  %v3419_v42 = vor.u32 %v3417_v59, %v7639_v63  ;;  %vm3134_vm11 = vcmp.gt.f32.partialorder %v7549_v53, 0.0  ;;  %6255 = vmatprep.subr.msk.bf16.mxu1 %vm3739_vm10, %v7654_v3  ;;  %v5133_v7 = vadd.f32 -1.0, %v6497_v60  ;;  %v3550_v17 = vor.u32 %v3549_v26, %v3545_v19 }
 0x34d   : > { %v3554_v4 = vrot.slane %v3552_v52, 1  ;;  %v3643_v24 = vshll.u32 %v7614_v47, 16  ;;  %v3423_v20 = vor.u32 %v3421_v14, %v7637_v23  ;;  %vm3132_vm12 = vcmp.gt.f32.partialorder %v7565_v56, 0.0 }
 0x34e   : > { %v6499_v40 = vpop.eup %6498  ;;  %v3648_v13 = vshll.u32 %v7659_v2, 16  ;;  %v7682_v9 = vsel %vm6595_vm2, %v7435_v5, %v7497_v1  ;;  %v3482_v10 = vrot.slane %v3417_v59, 7  ;;  %vm3135_vm13 = vcmp.gt.f32.partialorder %v7599_v38, 0.0 }
 0x34f   : > { %v5131_v54 = vadd.f32 -1.0, %v6499_v40  ;;  %v3555_v31 = vsel %vm702_vm4, %v3550_v17, %v3554_v4  ;;  %v7688_v50 = vsel %vm6595_vm2, %v3343_v6, %v3419_v42  ;;  %v3641_v37 = vshrl.u32 %v7614_v47, 16 }
 0x350   : > { %v7691_v25 = vsel %vm3739_vm10, %v3555_v31, 0  ;;  %v3645_v61 = vrot.slane %v3643_v24, 1  ;;  %v3294_v5 = vsel %vm3134_vm11, %v7549_v53, %v5133_v7  ;;  %vm3133_vm14 = vcmp.gt.f32.partialorder %v7604_v46, 0.0 }
 0x351   : > { %v6501_v62 = vpop.eup %6500  ;;  %5396 = vmatpush3.bf16.xpose.msra.mxu1 %v7691_v25  ;;  %v3559_v1 = vshll.u32 %v7510_v16, 16  ;;  %v3564_v6 = vshll.u32 %v7682_v9, 16  ;;  %v3650_v51 = vrot.slane %v3648_v13, 1  ;;  %v7705_v41 = vsel %vm6595_vm2, %v7577_v44, %v7593_v45 }
 0x352   : > { %v6503_v35 = vpop.eup %6502  ;;  %v5134_v52 = vadd.f32 -1.0, %v6501_v62  ;;  %v3646_v59 = vor.u32 %v3645_v61, %v3641_v37  ;;  %v3292_v53 = vsel %vm3132_vm12, %v7565_v56, %v5131_v54  ;;  %v3557_v60 = vshrl.u32 %v7510_v16, 16 }
 0x353   : > { %v5132_v19 = vadd.f32 -1.0, %v6503_v35  ;;  %v3561_v26 = vrot.slane %v3559_v1, 1  ;;  %v3655_v17 = vshll.u32 %v7665_v18, 16  ;;  %v3660_v44 = vshll.u32 %v7705_v41, 16  ;;  %v8409_v30 = vld [vmem:[#allocation2_spill] sm:$0xff] }
 0x354   : > { %v3295_v42 = vsel %vm3135_vm13, %v7599_v38, %v5134_v52  ;;  %v7715_v7 = vsel %vm702_vm4, %v3646_v59, %v3650_v51  ;;  %v3566_v24 = vrot.slane %v3564_v6, 1  ;;  %v3349_v38 = vshrl.u32 %v7651_v55, 16 }
 0x355   : > { %v7719_v45 = vpack.c.bf16 %v3295_v42, %v3294_v5  ;;  %v3293_v56 = vsel %vm3133_vm14, %v7604_v46, %v5132_v19  ;;  %6256 = vmatprep.subr.msk.bf16.mxu1 %vm3739_vm10, %v7715_v7  ;;  %v3562_v4 = vor.u32 %v3561_v26, %v3557_v60  ;;  %v3653_v13 = vshrl.u32 %v7665_v18, 16 }
 0x356   : > { %v7727_v40 = vpack.c.bf16 %v3293_v56, %v3292_v53  ;;  %v3657_v54 = vrot.slane %v3655_v17, 1  ;;  %v3474_v31 = vrot.slane %v3385_v22, 7  ;;  %v3325_v37 = vshrl.u32 %v7426_v12, 16 }
 0x357   : > { %v3567_v61 = vsel %vm702_vm4, %v3562_v4, %v3566_v24  ;;  %v3667_v46 = vshll.u32 %v7688_v50, 16  ;;  %v3662_v1 = vrot.slane %v3660_v44, 1  ;;  %v7741_v6 = vsel %vm6595_vm2, %v7639_v63, %v3482_v10 }
 0x358   : > { %v7736_v62 = vsel %vm3739_vm10, %v3567_v61, 0  ;;  %v3658_v5 = vor.u32 %v3657_v54, %v3653_v13  ;;  %v7748_v22 = vsel %vm6595_vm2, %v3319_v33, %v7583_v15  ;;  %v3391_v52 = vor.u32 %v3389_v32, %v7572_v34 }
 0x359   : > { %5398 = vmatpush3.bf16.xpose.msra.mxu1 %v7736_v62  ;;  %v3669_v35 = vrot.slane %v3667_v46, 1  ;;  %v7758_v63 = vsel %vm6595_vm2, %v3346_v28, %v3423_v20  ;;  %v3424_v10 = vrot.slane %v3349_v38, 7  ;;  %v7763_v59 = vrot.slane %v3325_v37, 7 }
 0x35a   : > { %v7761_v21 = vsel %vm702_vm4, %v3658_v5, %v3662_v1  ;;  %v3483_v33 = vrot.slane %v3421_v14, 7  ;;  %v3665_v15 = vshrl.u32 %v7688_v50, 16  ;;  %v3672_v51 = vshll.u32 %v7741_v6, 16 }
 0x35b   : > { %6257 = vmatprep.subr.msk.bf16.mxu1 %vm3739_vm10, %v7761_v21  ;;  %v3352_v53 = vshrl.u32 %v7625_v57, 16  ;;  %v3425_v28 = vshll.u32 %v7651_v55, 16  ;;  %v7776_v20 = vsel %vm6595_vm2, %v7553_v36, %v3474_v31  ;;  %v3571_v19 = vshll.u32 %v7748_v22, 16 }
 0x35c   : > { %v3670_v29 = vor.u32 %v3669_v35, %v3665_v15  ;;  %v3679_v14 = vshll.u32 %v7758_v63, 16  ;;  %v7784_v60 = vsel %vm6595_vm2, %v3322_v0, %v3391_v52  ;;  %v3393_v26 = vshll.u32 %v7426_v12, 16 }
 0x35d   : > { %v3427_v42 = vor.u32 %v3425_v28, %v3424_v10  ;;  %v3573_v55 = vrot.slane %v3571_v19, 1  ;;  %v3674_v17 = vrot.slane %v3672_v51, 1  ;;  %v3569_v44 = vshrl.u32 %v7748_v22, 16 }
 0x35e   : > { %v3576_v36 = vshll.u32 %v7776_v20, 16  ;;  %v3475_v56 = vrot.slane %v3389_v32, 7  ;;  %v3395_v4 = vor.u32 %v3393_v26, %v7763_v59  ;;  %v3428_v24 = vrot.slane %v3352_v53, 7 }
 0x35f   : > { %v7795_v0 = vsel %vm6595_vm2, %v7637_v23, %v3483_v33  ;;  %v7799_v12 = vsel %vm702_vm4, %v3670_v29, %v3674_v17  ;;  %v3574_v13 = vor.u32 %v3573_v55, %v3569_v44  ;;  %v3681_v54 = vrot.slane %v3679_v14, 1 }
 0x360   : > { %v3583_v31 = vshll.u32 %v7784_v60, 16  ;;  %v3328_v39 = vshrl.u32 %v7411_v43, 16  ;;  %v3429_v32 = vshll.u32 %v7625_v57, 16  ;;  %v7806_v61 = vsel %vm6595_vm2, %v3349_v38, %v3427_v42 }
 0x361   : > { %5400 = vmatpush3.bf16.xpose.msra.mxu1 %v7691_v25  ;;  %v3355_v23 = vshrl.u32 %v7727_v40, 16  ;;  %v3578_v46 = vrot.slane %v3576_v36, 1  ;;  %v3677_v5 = vshrl.u32 %v7758_v63, 16  ;;  %v3684_v1 = vshll.u32 %v7795_v0, 16 }
 0x362   : > { %6258 = vmatprep.subr.msk.bf16.mxu1 %vm3739_vm10, %v7799_v12  ;;  %v7815_v35 = vsel %vm6595_vm2, %v3325_v37, %v3395_v4  ;;  %v3431_v52 = vor.u32 %v3429_v32, %v3428_v24  ;;  %v3484_v57 = vrot.slane %v3425_v28, 7  ;;  %v7820_v38 = vsel %vm6595_vm2, %v7572_v34, %v3475_v56 }
 0x363   : > { %v3579_v33 = vsel %vm702_vm4, %v3574_v13, %v3578_v46  ;;  %v3682_v15 = vor.u32 %v3681_v54, %v3677_v5  ;;  %v3585_v51 = vrot.slane %v3583_v31, 1  ;;  %v3691_v19 = vshll.u32 %v7806_v61, 16 }
 0x364   : > { %v3396_v29 = vrot.slane %v3328_v39, 7  ;;  %v3397_v14 = vshll.u32 %v7411_v43, 16  ;;  %v3331_v42 = vshrl.u32 %v7491_v27, 16  ;;  %v7826_v37 = vrot.slane %v3355_v23, 7 }
 0x365   : > { %v3476_v55 = vrot.slane %v3393_v26, 7  ;;  %v3686_v28 = vrot.slane %v3684_v1, 1  ;;  %v3581_v17 = vshrl.u32 %v7784_v60, 16  ;;  %v3588_v34 = vshll.u32 %v7820_v38, 16 }
 0x366   : > { %v3433_v44 = vshll.u32 %v7727_v40, 16  ;;  %v7832_v36 = vsel %vm3739_vm10, %v3579_v33, 0  ;;  %v7836_v56 = vsel %vm6595_vm2, %v3424_v10, %v3484_v57  ;;  %v3595_v43 = vshll.u32 %v7815_v35, 16 }
 0x367   : > { %v7841_v4 = vsel %vm6595_vm2, %v3352_v53, %v3431_v52  ;;  %v7845_v26 = vsel %vm702_vm4, %v3682_v15, %v3686_v28  ;;  %v3586_v13 = vor.u32 %v3585_v51, %v3581_v17  ;;  %v3693_v40 = vrot.slane %v3691_v19, 1 }
 0x368   : > { %v3399_v54 = vor.u32 %v3397_v14, %v3396_v29  ;;  %v3400_v31 = vrot.slane %v3331_v42, 7  ;;  %v3485_v46 = vrot.slane %v3429_v32, 7  ;;  %v3435_v5 = vor.u32 %v3433_v44, %v7826_v37 }
 0x369   : > { %5402 = vmatpush3.bf16.xpose.msra.mxu1 %v7832_v36  ;;  %v3590_v10 = vrot.slane %v3588_v34, 1  ;;  %v3689_v1 = vshrl.u32 %v7806_v61, 16  ;;  %v3696_v53 = vshll.u32 %v7836_v56, 16  ;;  %v7855_v52 = vsel %vm6595_vm2, %v7763_v59, %v3476_v55 }
 0x36a   : > { %6259 = vmatprep.subr.msk.bf16.mxu1 %vm3739_vm10, %v7845_v26  ;;  %v3597_v57 = vrot.slane %v3595_v43, 1  ;;  %v3703_v33 = vshll.u32 %v7841_v4, 16  ;;  %v3401_v32 = vshll.u32 %v7491_v27, 16  ;;  %v3477_v19 = vrot.slane %v3397_v14, 7 }
 0x36b   : > { %v3591_v15 = vsel %vm702_vm4, %v3586_v13, %v3590_v10  ;;  %v3694_v51 = vor.u32 %v3693_v40, %v3689_v1  ;;  %v7862_v28 = vsel %vm6595_vm2, %v3328_v39, %v3399_v54  ;;  %v3593_v17 = vshrl.u32 %v7815_v35, 16 }
 0x36c   : > { %v3600_v34 = vshll.u32 %v7855_v52, 16  ;;  %v3403_v3 = vor.u32 %v3401_v32, %v3400_v31  ;;  %v7868_v59 = vsel %vm6595_vm2, %v3355_v23, %v3435_v5  ;;  %v3698_v55 = vrot.slane %v3696_v53, 1 }
 0x36d   : > { %v7872_v27 = vsel %vm6595_vm2, %v3428_v24, %v3485_v46  ;;  %v7875_v14 = vsel %vm3739_vm10, %v3591_v15, 0  ;;  %v3598_v43 = vor.u32 %v3597_v57, %v3593_v17  ;;  %v3701_v39 = vshrl.u32 %v7841_v4, 16 }
 0x36e   : > { %v3705_v13 = vrot.slane %v3703_v33, 1  ;;  %v7880_v40 = vsel %vm702_vm4, %v3694_v51, %v3698_v55  ;;  %v3607_v23 = vshll.u32 %v7862_v28, 16  ;;  %v3973_v54 = vrot.slane %v7504_v49, 1 }
 0x36f   : > { %v3974_v5 = vrot.slane %v7633_v48, 1  ;;  %v3602_v24 = vrot.slane %v3600_v34, 1  ;;  %v3708_v46 = vshll.u32 %v7872_v27, 16  ;;  %v3976_v10 = vrot.slane %v7510_v16, 1 }
 0x370   : > { %v3977_v1 = vrot.slane %v7682_v9, 1  ;;  %v3478_v53 = vrot.slane %v3401_v32, 7  ;;  %v3486_v57 = vrot.slane %v3433_v44, 7  ;;  %v3525_v33 = vsel %vm6595_vm2, %v3396_v29, %v3477_v19 }
 0x371   : > { %5404 = vmatpush3.bf16.xpose.msra.mxu1 %v7875_v14  ;;  %v7893_v15 = vsel %vm1368_vm5, %v3973_v54, %v3974_v5  ;;  %v3603_v48 = vsel %vm702_vm4, %v3598_v43, %v3602_v24  ;;  %v3706_v51 = vor.u32 %v3705_v13, %v3701_v39  ;;  %v3715_v17 = vshll.u32 %v7868_v59, 16 }
 0x372   : > { %6260 = vmatprep.subr.msk.bf16.mxu1 %vm3739_vm10, %v7880_v40  ;;  %v7898_v34 = vsel %vm1368_vm5, %v3976_v10, %v3977_v1  ;;  %v7902_v55 = vsel %vm6595_vm2, %v3331_v42, %v3403_v3  ;;  %v3609_v9 = vrot.slane %v3607_v23, 1  ;;  %v3979_v44 = vrot.slane %v7748_v22, 1 }
 0x373   : > { %v3980_v29 = vrot.slane %v7776_v20, 1  ;;  %v3710_v32 = vrot.slane %v3708_v46, 1  ;;  %v3605_v19 = vshrl.u32 %v7862_v28, 16  ;;  %v3612_v54 = vshll.u32 %v3525_v33, 16 }
 0x374   : > { %v3982_v43 = vrot.slane %v7784_v60, 1  ;;  %v7909_v39 = vsel %vm3739_vm10, %v3603_v48, 0  ;;  %v7914_v13 = vsel %vm6595_vm2, %v7826_v37, %v3486_v57  ;;  %v3983_v42 = vrot.slane %v7820_v38, 1 }
 0x375   : > { %v7917_v3 = vsel %vm1368_vm5, %v3979_v44, %v3980_v29  ;;  %v7921_v20 = vsel %vm702_vm4, %v3706_v51, %v3710_v32  ;;  %v3717_v23 = vrot.slane %v3715_v17, 1  ;;  %v3526_v5 = vsel %vm6595_vm2, %v3400_v31, %v3478_v53 }
 0x376   : > { %v3985_v24 = vrot.slane %v7815_v35, 1  ;;  %v3610_v46 = vor.u32 %v3609_v9, %v3605_v19  ;;  %v3619_v37 = vshll.u32 %v7902_v55, 16  ;;  %v7929_v10 = vsel %vm1368_vm5, %v3982_v43, %v3983_v42 }
 0x377   : > { %v3986_v1 = vrot.slane %v7855_v52, 1  ;;  %v3988_v38 = vrot.slane %v7862_v28, 1  ;;  %v3989_v57 = vrot.slane %v3525_v33, 1  ;;  %v3614_v48 = vrot.slane %v3612_v54, 1 }
 0x378   : > { %v3713_v31 = vshrl.u32 %v7868_v59, 16  ;;  %v3720_v53 = vshll.u32 %v7914_v13, 16  ;;  %v3991_v9 = vrot.slane %v7902_v55, 1  ;;  %v3992_v52 = vrot.slane %v3526_v5, 1 }
 0x379   : > { %5406 = vmatpush3.bf16.xpose.msra.mxu1 %v7909_v39  ;;  %v7938_v51 = vsel %vm1368_vm5, %v3985_v24, %v3986_v1  ;;  %v7941_v17 = vsel %vm1368_vm5, %v3988_v38, %v3989_v57  ;;  %v3615_v44 = vsel %vm702_vm4, %v3610_v46, %v3614_v48  ;;  %v3621_v32 = vrot.slane %v3619_v37, 1  ;;  %v6424_v57 = vld [vmem:[%s8402_s3] sm:$0xff]  }
 0x37a   : > { %6261 = vmatprep.subr.msk.bf16.mxu1 %vm3739_vm10, %v7921_v20  ;;  %v3718_v29 = vor.u32 %v3717_v23, %v3713_v31  ;;  %v7946_v33 = vsel %vm1368_vm5, %v3991_v9, %v3992_v52  ;;  %v3722_v19 = vrot.slane %v3720_v53, 1  ;;  %v3617_v54 = vshrl.u32 %v7902_v55, 16  ;;  %v6425_v9 = vld [vmem:[%s8402_s3 + $0x8] sm:$0xff]  }
 0x37b   : > { %v3624_v43 = vshll.u32 %v3526_v5, 16  ;;  %v7950_v42 = vsel %vm3739_vm10, %v3615_v44, 0  ;;  %v6423_v5 = vld [vmem:[%s8402_s3 + $0x18] sm:$0xff]   ;;  %v7972_v38 = vsel %vm3739_vm10, %v7504_v49, 0  ;;  %v7983_v48 = vsel %vm3739_vm10, %v7510_v16, 0 }
 0x37c   : > { %v7954_v24 = vsel %vm702_vm4, %v3718_v29, %v3722_v19  ;;  %v3622_v1 = vor.u32 %v3621_v32, %v3617_v54  ;;  %v8002_v49 = vsel %vm3739_vm10, %v7784_v60, 0  ;;  %v8009_v16 = vsel %vm3739_vm10, %v7815_v35, 0 }
 0x37d   : > { %v3626_v23 = vrot.slane %v3624_v43, 1  ;;  %v3994_v60 = vrot.slane %v7588_v11, 1  ;;  %v3995_v31 = vrot.slane %v7610_v8, 1  ;;  %v8025_v35 = vsel %vm3739_vm10, %v7902_v55, 0 }
 0x37e   : > { %v3998_v8 = vrot.slane %v7659_v2, 1  ;;  %v8041_v55 = vsel %vm3739_vm10, %v7893_v15, 0  ;;  %v4000_v44 = vrot.slane %v7665_v18, 1  ;;  %v6426_v2 = vld [vmem:[%s8402_s3 + $0x20] sm:$0xff]   ;;  %v4001_v29 = vrot.slane %v7705_v41, 1 }
 0x37f   : > { %v3627_v46 = vsel %vm702_vm4, %v3622_v1, %v3626_v23  ;;  %v8029_v53 = vsel %vm1368_vm5, %v3994_v60, %v3995_v31  ;;  %v8057_v15 = vsel %vm3739_vm10, %v7898_v34, 0  ;;  %v4003_v19 = vrot.slane %v7688_v50, 1 }
 0x380   : > { %v7960_v37 = vsel %vm3739_vm10, %v3627_v46, 0  ;;  %v8062_v32 = vsel %vm1368_vm5, %v4000_v44, %v4001_v29  ;;  %v4004_v41 = vrot.slane %v7741_v6, 1  ;;  %v4006_v54 = vrot.slane %v7758_v63, 1 }
 0x381   : > { %5408 = vmatpush3.bf16.xpose.msra.mxu1 %v7950_v42  ;;  %v4007_v43 = vrot.slane %v7795_v0, 1  ;;  %v8079_v1 = vsel %vm3739_vm10, %v7917_v3, 0  ;;  %v4009_v23 = vrot.slane %v7806_v61, 1  ;;  %v4010_v46 = vrot.slane %v7836_v56, 1 }
 0x382   : > { %6262 = vmatprep.subr.msk.bf16.mxu1 %vm3739_vm10, %v7954_v24  ;;  %v8071_v34 = vsel %vm1368_vm5, %v4003_v19, %v4004_v41  ;;  %v4012_v3 = vrot.slane %v7841_v4, 1  ;;  %v8103_v60 = vsel %vm3739_vm10, %v7938_v51, 0  ;;  %v4016_v31 = vrot.slane %v7914_v13, 1  ;;  %v6427_v13 = vld [vmem:[%s8402_s3 + $0x28] sm:$0xff]  }
 0x383   : > { %v8083_v6 = vsel %vm1368_vm5, %v4006_v54, %v4007_v43  ;;  %v8095_v0 = vsel %vm1368_vm5, %v4009_v23, %v4010_v46  ;;  %v8125_v51 = vsel %vm3739_vm10, %v7946_v33, 0  ;;  %v3358_v33 = vshrl.u32 %v7719_v45, 16 }
 0x389   : > { %5410 = vmatpush3.bf16.xpose.msra.mxu1 %v7960_v37 }
 0x38a   : > { %6263 = vmatprep.subr.msk.bf16.mxu1 %vm3739_vm10, %v7588_v11 }
 0x390   : > { %5412 = vmatmul.mubr.msk.bf16.vlgmr.msra.gmra.mrb[0].mxu1 %vm3739_vm10, %v7367_v58  ;;  %v7995_v58 = vsel %vm3739_vm10, %v7748_v22, 0  ;;  %v8016_v22 = vsel %vm3739_vm10, %v7862_v28, 0  ;;  %v3997_v28 = vrot.slane %v7614_v47, 1 }
 0x391   : > { %5416 = vmatpush3.bf16.xpose.msra.mxu1 %v7972_v38  ;;  %5413 = vmatprep.mubr.msk.bf16.mxu1 %vm3739_vm10, %v6423_v5 }
 0x392   : > { %6264 = vmatprep.subr.msk.bf16.mxu1 %vm3739_vm10, %v7614_v47  ;;  %v8045_v52 = vsel %vm1368_vm5, %v3997_v28, %v3998_v8  ;;  %v8115_v28 = vsel %vm3739_vm10, %v7941_v17, 0  ;;  %v6428_v17 = vld [vmem:[%s8402_s3 + $0x30] sm:$0xff]  }
 0x398   : > { %5414 = vmatmul.mubr.msk.bf16.gmra.mrb[4].mxu1 %vm3739_vm10, %v6423_v5  ;;  %v8091_v5 = vsel %vm3739_vm10, %v7929_v10, 0  ;;  %v4015_v10 = vrot.slane %v7868_v59, 1 }
 0x399   : > { %5418 = vmatpush3.bf16.xpose.msra.mxu1 %v7983_v48  ;;  %5431 = vmatprep.mubr.msk.bf16.mxu1 %vm3739_vm10, %v6424_v57 }
 0x39a   : > { %6265 = vmatprep.subr.msk.bf16.mxu1 %vm3739_vm10, %v7665_v18 }
 0x3a1   : > { %5420 = vmatpush3.bf16.xpose.msra.mxu1 %v7972_v38 }
 0x3a2   : > { %6266 = vmatprep.subr.msk.bf16.mxu1 %vm3739_vm10, %v7688_v50 }
 0x3a9   : > { %5422 = vmatpush3.bf16.xpose.msra.mxu1 %v7995_v58 }
 0x3aa   : > { %6267 = vmatprep.subr.msk.bf16.mxu1 %vm3739_vm10, %v7758_v63 }
 0x3b1   : > { %5424 = vmatpush3.bf16.xpose.msra.mxu1 %v8002_v49 }
 0x3b2   : > { %6268 = vmatprep.subr.msk.bf16.mxu1 %vm3739_vm10, %v7806_v61 }
 0x3b9   : > { %5426 = vmatpush3.bf16.xpose.msra.mxu1 %v8009_v16 }
 0x3ba   : > { %6269 = vmatprep.subr.msk.bf16.mxu1 %vm3739_vm10, %v7841_v4 }
 0x3c1   : > { %5428 = vmatpush3.bf16.xpose.msra.mxu1 %v8016_v22 }
 0x3c2   : > { %6270 = vmatprep.subr.msk.bf16.mxu1 %vm3739_vm10, %v7868_v59 }
 0x3c9   : > { %5430 = vmatpush3.bf16.xpose.msra.mxu1 %v8025_v35 }
 0x3ca   : > { %6271 = vmatprep.subr.msk.bf16.mxu1 %vm3739_vm10, %v8029_v53 }
 0x3d0   : > { %5432 = vmatmul.mubr.msk.bf16.vlgmr.msra.gmra.mrb[0].mxu1 %vm3739_vm10, %v6424_v57  ;;  %v4013_v57 = vrot.slane %v7872_v27, 1  ;;  %v8119_v27 = vsel %vm1368_vm5, %v4015_v10, %v4016_v31  ;;  %v6431_v10 = vld [vmem:[%s8402_s3 + $0x48] sm:$0xff]   ;;  %v6432_v31 = vld [vmem:[%s8402_s3 + $0x50] sm:$0xff]  }
 0x3d1   : > { %5436 = vmatpush3.bf16.xpose.msra.mxu1 %v8041_v55  ;;  %5433 = vmatprep.mubr.msk.bf16.mxu1 %vm3739_vm10, %v6425_v9 }
 0x3d2   : > { %6272 = vmatprep.subr.msk.bf16.mxu1 %vm3739_vm10, %v8045_v52  ;;  %v8107_v56 = vsel %vm1368_vm5, %v4012_v3, %v4013_v57  ;;  %v8214_v57 = vsel %vm3739_vm10, %v8409_v30, 0 }
 0x3d8   : > { %5434 = vmatmul.mubr.msk.bf16.gmra.mrb[4].mxu1 %vm3739_vm10, %v6425_v9  ;;  %v3437_v9 = vshll.u32 %v7719_v45, 16  ;;  %v6429_v45 = vld [vmem:[%s8402_s3 + $0x38] sm:$0xff]  }
 0x3d9   : > { %5438 = vmatpush3.bf16.xpose.msra.mxu1 %v8057_v15  ;;  %5451 = vmatprep.mubr.msk.bf16.mxu1 %vm3739_vm10, %v6426_v2 }
 0x3da   : > { %6273 = vmatprep.subr.msk.bf16.mxu1 %vm3739_vm10, %v8062_v32 }
 0x3e1   : > { %5440 = vmatpush3.bf16.xpose.msra.mxu1 %v8041_v55 }
 0x3e2   : > { %6274 = vmatprep.subr.msk.bf16.mxu1 %vm3739_vm10, %v8071_v34 }
 0x3e9   : > { %5442 = vmatpush3.bf16.xpose.msra.mxu1 %v8079_v1 }
 0x3ea   : > { %6275 = vmatprep.subr.msk.bf16.mxu1 %vm3739_vm10, %v8083_v6 }
 0x3f1   : > { %5444 = vmatpush3.bf16.xpose.msra.mxu1 %v8091_v5 }
 0x3f2   : > { %6276 = vmatprep.subr.msk.bf16.mxu1 %vm3739_vm10, %v8095_v0 }
 0x3f9   : > { %5446 = vmatpush3.bf16.xpose.msra.mxu1 %v8103_v60 }
 0x3fa   : > { %6277 = vmatprep.subr.msk.bf16.mxu1 %vm3739_vm10, %v8107_v56 }
 0x401   : > { %5448 = vmatpush3.bf16.xpose.msra.mxu1 %v8115_v28 }
 0x402   : > { %6278 = vmatprep.subr.msk.bf16.mxu1 %vm3739_vm10, %v8119_v27 }
 0x409   : > { %5450 = vmatpush3.bf16.xpose.msra.mxu1 %v8125_v51 }
 0x40a   : > { %6279 = vmatprep.subr.msk.bf16.mxu1 %vm3739_vm10, %v7614_v47 }
 0x410   : > { %5452 = vmatmul.mubr.msk.bf16.vlgmr.msra.gmra.mrb[0].mxu1 %vm3739_vm10, %v6426_v2  ;;  %v8169_v2 = vsel %vm3739_vm10, %v7588_v11, 0  ;;  %v6430_v11 = vld [vmem:[%s8402_s3 + $0x40] sm:$0xff]  }
 0x411   : > { %5456 = vmatpush3.bf16.xpose.msra.mxu1 %v7983_v48  ;;  %5453 = vmatprep.mubr.msk.bf16.mxu1 %vm3739_vm10, %v6427_v13  ;;  %v3436_v48 = vrot.slane %v3358_v33, 7 }
 0x412   : > { %6280 = vmatprep.subr.msk.bf16.mxu1 %vm3739_vm10, %v7665_v18 }
 0x413   : > { %v3439_v8 = vor.u32 %v3437_v9, %v3436_v48 }
 0x415   : > { %v8163_v44 = vsel %vm6595_vm2, %v3358_v33, %v3439_v8  ;;  %v8256_v33 = vsel %vm3739_vm10, %v8029_v53, 0  ;;  %v6434_v53 = vld [vmem:[%s8402_s3 + $0x60] sm:$0xff]  }
 0x416   : > { %v4232_v29 = vshll.u32 %v8163_v44, 16  ;;  %v4230_v54 = vshrl.u32 %v8163_v44, 16 }
 0x418   : > { %5454 = vmatmul.mubr.msk.bf16.gmra.mrb[4].mxu1 %vm3739_vm10, %v6427_v13  ;;  %v4234_v41 = vrot.slane %v4232_v29, 1 }
 0x419   : > { %5458 = vmatpush3.bf16.xpose.msra.mxu1 %v7972_v38  ;;  %5471 = vmatprep.mubr.msk.bf16.mxu1 %vm3739_vm10, %v6428_v17 }
 0x41a   : > { %6281 = vmatprep.subr.msk.bf16.mxu1 %vm3739_vm10, %v7688_v50  ;;  %v4235_v23 = vor.u32 %v4234_v41, %v4230_v54 }
 0x421   : > { %5460 = vmatpush3.bf16.xpose.msra.mxu1 %v7995_v58 }
 0x422   : > { %6282 = vmatprep.subr.msk.bf16.mxu1 %vm3739_vm10, %v7758_v63 }
 0x429   : > { %5462 = vmatpush3.bf16.xpose.msra.mxu1 %v8002_v49 }
 0x42a   : > { %6283 = vmatprep.subr.msk.bf16.mxu1 %vm3739_vm10, %v7806_v61 }
 0x431   : > { %5464 = vmatpush3.bf16.xpose.msra.mxu1 %v8009_v16 }
 0x432   : > { %6284 = vmatprep.subr.msk.bf16.mxu1 %vm3739_vm10, %v7841_v4 }
 0x439   : > { %5466 = vmatpush3.bf16.xpose.msra.mxu1 %v8016_v22 }
 0x43a   : > { %6285 = vmatprep.subr.msk.bf16.mxu1 %vm3739_vm10, %v7868_v59 }
 0x441   : > { %5468 = vmatpush3.bf16.xpose.msra.mxu1 %v8025_v35 }
 0x442   : > { %6286 = vmatprep.subr.msk.bf16.mxu1 %vm3739_vm10, %v8163_v44 }
 0x449   : > { %5470 = vmatpush3.bf16.xpose.msra.mxu1 %v8169_v2 }
 0x44a   : > { %6287 = vmatprep.subr.msk.bf16.mxu1 %vm3739_vm10, %v7715_v7 }
 0x450   : > { %5472 = vmatmul.mubr.msk.bf16.vlgmr.msra.gmra.mrb[0].mxu1 %vm3739_vm10, %v6428_v17 }
 0x451   : > { %5476 = vmatpush3.bf16.xpose.msra.mxu1 %v7736_v62  ;;  %5473 = vmatprep.mubr.msk.bf16.mxu1 %vm3739_vm10, %v6429_v45  ;;  %v3487_v62 = vrot.slane %v3437_v9, 7 }
 0x452   : > { %6288 = vmatprep.subr.msk.bf16.mxu1 %vm3739_vm10, %v7761_v21 }
 0x453   : > { %v3535_v19 = vsel %vm6595_vm2, %v3436_v48, %v3487_v62  ;;  %v6433_v48 = vld [vmem:[%s8402_s3 + $0x58] sm:$0xff]  }
 0x454   : > { %v4237_v43 = vshll.u32 %v3535_v19, 16  ;;  %v4329_v13 = vrot.slane %v3535_v19, 1 }
 0x456   : > { %v4239_v46 = vrot.slane %v4237_v43, 1 }
 0x458   : > { %5474 = vmatmul.mubr.msk.bf16.gmra.mrb[4].mxu1 %vm3739_vm10, %v6429_v45  ;;  %v8208_v3 = vsel %vm702_vm4, %v4235_v23, %v4239_v46 }
 0x459   : > { %5478 = vmatpush3.bf16.xpose.msra.mxu1 %v7691_v25  ;;  %5491 = vmatprep.mubr.msk.bf16.mxu1 %vm3739_vm10, %v6430_v11 }
 0x45a   : > { %6289 = vmatprep.subr.msk.bf16.mxu1 %vm3739_vm10, %v7799_v12 }
 0x461   : > { %5480 = vmatpush3.bf16.xpose.msra.mxu1 %v7832_v36 }
 0x462   : > { %6290 = vmatprep.subr.msk.bf16.mxu1 %vm3739_vm10, %v7845_v26 }
 0x469   : > { %5482 = vmatpush3.bf16.xpose.msra.mxu1 %v7875_v14 }
 0x46a   : > { %6291 = vmatprep.subr.msk.bf16.mxu1 %vm3739_vm10, %v7880_v40 }
 0x471   : > { %5484 = vmatpush3.bf16.xpose.msra.mxu1 %v7909_v39 }
 0x472   : > { %6292 = vmatprep.subr.msk.bf16.mxu1 %vm3739_vm10, %v7921_v20 }
 0x479   : > { %5486 = vmatpush3.bf16.xpose.msra.mxu1 %v7950_v42 }
 0x47a   : > { %6293 = vmatprep.subr.msk.bf16.mxu1 %vm3739_vm10, %v7954_v24 }
 0x481   : > { %5488 = vmatpush3.bf16.xpose.msra.mxu1 %v7960_v37 }
 0x482   : > { %6294 = vmatprep.subr.msk.bf16.mxu1 %vm3739_vm10, %v8208_v3 }
 0x489   : > { %5490 = vmatpush3.bf16.xpose.msra.mxu1 %v8214_v57 }
 0x48a   : > { %6295 = vmatprep.subr.msk.bf16.mxu1 %vm3739_vm10, %v8045_v52 }
 0x490   : > { %5492 = vmatmul.mubr.msk.bf16.vlgmr.msra.gmra.mrb[0].mxu1 %vm3739_vm10, %v6430_v11 }
 0x491   : > { %5496 = vmatpush3.bf16.xpose.msra.mxu1 %v8057_v15  ;;  %5493 = vmatprep.mubr.msk.bf16.mxu1 %vm3739_vm10, %v6431_v10  ;;  %v4328_v15 = vrot.slane %v8163_v44, 1 }
 0x492   : > { %6296 = vmatprep.subr.msk.bf16.mxu1 %vm3739_vm10, %v8062_v32 }
 0x493   : > { %v8250_v17 = vsel %vm1368_vm5, %v4328_v15, %v4329_v13 }
 0x498   : > { %5494 = vmatmul.mubr.msk.bf16.gmra.mrb[4].mxu1 %vm3739_vm10, %v6431_v10 }
 0x499   : > { %5498 = vmatpush3.bf16.xpose.msra.mxu1 %v8041_v55  ;;  %5511 = vmatprep.mubr.msk.bf16.mxu1 %vm3739_vm10, %v6432_v31 }
 0x49a   : > { %6297 = vmatprep.subr.msk.bf16.mxu1 %vm3739_vm10, %v8071_v34 }
 0x4a1   : > { %5500 = vmatpush3.bf16.xpose.msra.mxu1 %v8079_v1 }
 0x4a2   : > { %6298 = vmatprep.subr.msk.bf16.mxu1 %vm3739_vm10, %v8083_v6 }
 0x4a9   : > { %5502 = vmatpush3.bf16.xpose.msra.mxu1 %v8091_v5 }
 0x4aa   : > { %6299 = vmatprep.subr.msk.bf16.mxu1 %vm3739_vm10, %v8095_v0 }
 0x4b1   : > { %5504 = vmatpush3.bf16.xpose.msra.mxu1 %v8103_v60 }
 0x4b2   : > { %6300 = vmatprep.subr.msk.bf16.mxu1 %vm3739_vm10, %v8107_v56 }
 0x4b9   : > { %5506 = vmatpush3.bf16.xpose.msra.mxu1 %v8115_v28 }
 0x4ba   : > { %6301 = vmatprep.subr.msk.bf16.mxu1 %vm3739_vm10, %v8119_v27 }
 0x4c1   : > { %5508 = vmatpush3.bf16.xpose.msra.mxu1 %v8125_v51 }
 0x4c2   : > { %6302 = vmatprep.subr.msk.bf16.mxu1 %vm3739_vm10, %v8250_v17 }
 0x4c9   : > { %5510 = vmatpush3.bf16.xpose.msra.mxu1 %v8256_v33 }
 0x4ca   : > { %6303 = vmatprep.subr.msk.bf16.mxu1 %vm3739_vm10, %v7665_v18  ;;  %v3876_v18 = vsel %vm3739_vm10, %v7614_v47, 0  ;;  %v6436_v47 = vld [vmem:[%s8402_s3 + $0x70] sm:$0xff]  }
 0x4d0   : > { %5512 = vmatmul.mubr.msk.bf16.vlgmr.msra.gmra.mrb[0].mxu1 %vm3739_vm10, %v6432_v31 }
 0x4d1   : > { %5516 = vmatpush3.bf16.xpose.msra.mxu1 %v7972_v38  ;;  %5513 = vmatprep.mubr.msk.bf16.mxu1 %vm3739_vm10, %v6433_v48 }
 0x4d2   : > { %6304 = vmatprep.subr.msk.bf16.mxu1 %vm3739_vm10, %v7688_v50  ;;  %v6435_v50 = vld [vmem:[%s8402_s3 + $0x68] sm:$0xff]  }
 0x4d8   : > { %5514 = vmatmul.mubr.msk.bf16.gmra.mrb[4].mxu1 %vm3739_vm10, %v6433_v48 }
 0x4d9   : > { %5518 = vmatpush3.bf16.xpose.msra.mxu1 %v7995_v58  ;;  %5531 = vmatprep.mubr.msk.bf16.mxu1 %vm3739_vm10, %v6434_v53 }
 0x4da   : > { %6305 = vmatprep.subr.msk.bf16.mxu1 %vm3739_vm10, %v7758_v63  ;;  %v3536_v63 = vld [vmem:[%s8403_s4] sm:$0xff] }
 0x4e1   : > { %5520 = vmatpush3.bf16.xpose.msra.mxu1 %v8002_v49 }
 0x4e2   : > { %6306 = vmatprep.subr.msk.bf16.mxu1 %vm3739_vm10, %v7806_v61  ;;  %v3539_v61 = vld [vmem:[%s8403_s4 + $0x18] sm:$0xff] }
 0x4e9   : > { %5522 = vmatpush3.bf16.xpose.msra.mxu1 %v8009_v16 }
 0x4ea   : > { %6307 = vmatprep.subr.msk.bf16.mxu1 %vm3739_vm10, %v7841_v4  ;;  %v6437_v4 = vld [vmem:[%s8402_s3 + $0x78] sm:$0xff]  }
 0x4f1   : > { %5524 = vmatpush3.bf16.xpose.msra.mxu1 %v8016_v22 }
 0x4f2   : > { %6308 = vmatprep.subr.msk.bf16.mxu1 %vm3739_vm10, %v7868_v59 }
 0x4f9   : > { %5526 = vmatpush3.bf16.xpose.msra.mxu1 %v8025_v35 }
 0x4fa   : > { %6309 = vmatprep.subr.msk.bf16.mxu1 %vm3739_vm10, %v8163_v44 }
 0x501   : > { %5528 = vmatpush3.bf16.xpose.msra.mxu1 %v8169_v2 }
 0x502   : > { %6310 = vmatprep.subr.msk.bf16.mxu1 %vm3739_vm10, %v7868_v59  ;;  %v6439_v59 = vld [vmem:[%s8402_s3 + $0x88] sm:$0xff]  }
 0x509   : > { %5530 = vmatpush3.bf16.xpose.msra.mxu1 %v3876_v18 }
 0x50a   : > { %6311 = vmatprep.subr.msk.bf16.mxu1 %vm3739_vm10, %v7761_v21  ;;  %v6528_v21 = vmov 0  }
 0x50b   : > { %6336 = vset.pattern.permute.xlu0 %v6528_v21  ;;  %6337 = vset.pattern.permute.xlu1 %v6528_v21 }
 0x50c   : > { %4664 = vperm.xlu0 %6336, %v3536_v63  }
 0x510   : > { %5532 = vmatmul.mubr.msk.bf16.vlgmr.msra.gmra.mrb[0].mxu1 %vm3739_vm10, %v6434_v53 }
 0x511   : > { %5536 = vmatpush3.bf16.xpose.msra.mxu1 %v7691_v25  ;;  %5533 = vmatprep.mubr.msk.bf16.mxu1 %vm3739_vm10, %v6435_v50  ;;  %v3538_v25 = vld [vmem:[%s8403_s4 + $0x10] sm:$0xff] }
 0x512   : > { %6312 = vmatprep.subr.msk.bf16.mxu1 %vm3739_vm10, %v7799_v12  ;;  %v3537_v12 = vld [vmem:[%s8403_s4 + $0x8] sm:$0xff]  ;;  %4674 = vperm.xlu1 %6337, %v3538_v25  }
 0x513   : > { %4669 = vperm.xlu0 %6336, %v3537_v12  }
 0x516   : > { %4679 = vperm.xlu1 %6337, %v3539_v61  }
 0x518   : > { %5534 = vmatmul.mubr.msk.bf16.gmra.mrb[4].mxu1 %vm3739_vm10, %v6435_v50 }
 0x519   : > { %5538 = vmatpush3.bf16.xpose.msra.mxu1 %v7832_v36  ;;  %5551 = vmatprep.mubr.msk.bf16.mxu1 %vm3739_vm10, %v6436_v47  ;;  %v3771_v36 = vsel %vm3739_vm10, %v7715_v7, 0  ;;  %v6438_v7 = vld [vmem:[%s8402_s3 + $0x80] sm:$0xff]  }
 0x51a   : > { %6313 = vmatprep.subr.msk.bf16.mxu1 %vm3739_vm10, %v7845_v26  ;;  %v4064_v26 = vsel %vm3739_vm10, %v8045_v52, 0 }
 0x521   : > { %5540 = vmatpush3.bf16.xpose.msra.mxu1 %v7875_v14 }
 0x522   : > { %6314 = vmatprep.subr.msk.bf16.mxu1 %vm3739_vm10, %v7880_v40 }
 0x529   : > { %5542 = vmatpush3.bf16.xpose.msra.mxu1 %v7909_v39 }
 0x52a   : > { %6315 = vmatprep.subr.msk.bf16.mxu1 %vm3739_vm10, %v7921_v20 }
 0x531   : > { %5544 = vmatpush3.bf16.xpose.msra.mxu1 %v7950_v42 }
 0x532   : > { %6316 = vmatprep.subr.msk.bf16.mxu1 %vm3739_vm10, %v7954_v24 }
 0x539   : > { %5546 = vmatpush3.bf16.xpose.msra.mxu1 %v7960_v37 }
 0x53a   : > { %6317 = vmatprep.subr.msk.bf16.mxu1 %vm3739_vm10, %v8208_v3 }
 0x541   : > { %5548 = vmatpush3.bf16.xpose.msra.mxu1 %v8214_v57 }
 0x542   : > { %6318 = vmatprep.subr.msk.bf16.mxu1 %vm3739_vm10, %v7954_v24 }
 0x549   : > { %5550 = vmatpush3.bf16.xpose.msra.mxu1 %v3771_v36 }
 0x54a   : > { %6319 = vmatprep.subr.msk.bf16.mxu1 %vm3739_vm10, %v8062_v32 }
 0x550   : > { %5552 = vmatmul.mubr.msk.bf16.vlgmr.msra.gmra.mrb[0].mxu1 %vm3739_vm10, %v6436_v47 }
 0x551   : > { %5556 = vmatpush3.bf16.xpose.msra.mxu1 %v8041_v55  ;;  %5553 = vmatprep.mubr.msk.bf16.mxu1 %vm3739_vm10, %v6437_v4 }
 0x552   : > { %6320 = vmatprep.subr.msk.bf16.mxu1 %vm3739_vm10, %v8071_v34 }
 0x558   : > { %5554 = vmatmul.mubr.msk.bf16.gmra.mrb[4].mxu1 %vm3739_vm10, %v6437_v4 }
 0x559   : > { %5558 = vmatpush3.bf16.xpose.msra.mxu1 %v8079_v1  ;;  %5571 = vmatprep.mubr.msk.bf16.mxu1 %vm3739_vm10, %v6438_v7 }
 0x55a   : > { %6321 = vmatprep.subr.msk.bf16.mxu1 %vm3739_vm10, %v8083_v6 }
 0x561   : > { %5560 = vmatpush3.bf16.xpose.msra.mxu1 %v8091_v5 }
 0x562   : > { %6322 = vmatprep.subr.msk.bf16.mxu1 %vm3739_vm10, %v8095_v0 }
 0x569   : > { %5562 = vmatpush3.bf16.xpose.msra.mxu1 %v8103_v60 }
 0x56a   : > { %6323 = vmatprep.subr.msk.bf16.mxu1 %vm3739_vm10, %v8107_v56 }
 0x571   : > { %5564 = vmatpush3.bf16.xpose.msra.mxu1 %v8115_v28 }
 0x572   : > { %6324 = vmatprep.subr.msk.bf16.mxu1 %vm3739_vm10, %v8119_v27 }
 0x579   : > { %5566 = vmatpush3.bf16.xpose.msra.mxu1 %v8125_v51 }
 0x57a   : > { %6325 = vmatprep.subr.msk.bf16.mxu1 %vm3739_vm10, %v8250_v17 }
 0x581   : > { %5568 = vmatpush3.bf16.xpose.msra.mxu1 %v8256_v33 }
 0x582   : > { %6326 = vmatprep.subr.msk.bf16.mxu1 %vm3739_vm10, %v8119_v27 }
 0x589   : > { %5570 = vmatpush3.bf16.xpose.msra.mxu1 %v4064_v26 }
 0x58b   : > { %v4665_v14 = vpop.permute.xlu0 %4664 }
 0x590   : > { %5572 = vmatmul.mubr.msk.bf16.vlgmr.msra.gmra.mrb[0].mxu1 %vm3739_vm10, %v6438_v7 }
 0x591   : > { %5573 = vmatprep.mubr.msk.bf16.mxu1 %vm3739_vm10, %v6439_v59  ;;  %v4675_v22 = vpop.permute.xlu1 %4674 }
 0x592   : > { %v4670_v39 = vpop.permute.xlu0 %4669 }
 0x595   : > { %v4680_v56 = vpop.permute.xlu1 %4679 }
 0x598   : > { %5574 = vmatmul.mubr.msk.bf16.gmra.mrb[4].mxu1 %vm3739_vm10, %v6439_v59 }
 0x663   : > { %v4635_v40 = vpop.f32.mrb[0].mxu1 }
 0x664   : > { %v4682_v20 = vadd.f32 %v4665_v14, %v4635_v40  ;;  %v4637_v42 = vpop.f32.mrb[1].mxu1 }
 0x665   : > { %v4683_v24 = vadd.f32 %v4665_v14, %v4637_v42  ;;  %v4639_v37 = vpop.f32.mrb[2].mxu1 }
 0x666   : > { %v4698_v38 = vmin.f32 %v4682_v20, 0.0  ;;  %v4684_v58 = vadd.f32 %v4670_v39, %v4639_v37  ;;  %v4641_v49 = vpop.f32.mrb[3].mxu1  ;;  %vm4690_vm2 = vcmp.gt.f32.partialorder %v4682_v20, 0.0 }
 0x667   : > { %v4699_v16 = vmin.f32 %v4683_v24, 0.0  ;;  %v4685_v35 = vadd.f32 %v4670_v39, %v4641_v49  ;;  %vm4691_vm4 = vcmp.gt.f32.partialorder %v4683_v24, 0.0 }
 0x668   : > { %v4706_v55 = vmul.f32 1.442695, %v4698_v38  ;;  %v4700_v52 = vmin.f32 %v4684_v58, 0.0  ;;  %vm4692_vm5 = vcmp.gt.f32.partialorder %v4684_v58, 0.0 }
 0x669   : > { %v4708_v32 = vmul.f32 1.442695, %v4699_v16  ;;  %v4701_v34 = vmin.f32 %v4685_v35, 0.0  ;;  %vm4693_vm10 = vcmp.gt.f32.partialorder %v4685_v35, 0.0 }
 0x66a   : > { %6504 = vpow2.f32 %v4706_v55  ;;  %v4710_v1 = vmul.f32 1.442695, %v4700_v52 }
 0x66b   : > { %6506 = vpow2.f32 %v4708_v32  ;;  %v4712_v6 = vmul.f32 1.442695, %v4701_v34  ;;  %v4645_v5 = vpop.f32.mrb[4].mxu1 }
 0x66c   : > { %6508 = vpow2.f32 %v4710_v1  ;;  %v4686_v0 = vadd.f32 %v4675_v22, %v4645_v5  ;;  %v4647_v60 = vpop.f32.mrb[5].mxu1 }
 0x66d   : > { %6510 = vpow2.f32 %v4712_v6  ;;  %v4687_v28 = vadd.f32 %v4675_v22, %v4647_v60  ;;  %v4649_v27 = vpop.f32.mrb[6].mxu1 }
 0x66e   : > { %v4702_v51 = vmin.f32 %v4686_v0, 0.0  ;;  %v4688_v9 = vadd.f32 %v4680_v56, %v4649_v27  ;;  %v4651_v8 = vpop.f32.mrb[7].mxu1  ;;  %vm4694_vm15 = vcmp.gt.f32.partialorder %v4686_v0, 0.0 }
 0x66f   : > { %v4703_v44 = vmin.f32 %v4687_v28, 0.0  ;;  %v4689_v2 = vadd.f32 %v4680_v56, %v4651_v8  ;;  %vm4695_vm0 = vcmp.gt.f32.partialorder %v4687_v28, 0.0 }
 0x670   : > { %v4714_v45 = vmul.f32 1.442695, %v4702_v51  ;;  %v4704_v11 = vmin.f32 %v4688_v9, 0.0  ;;  %vm4696_vm1 = vcmp.gt.f32.partialorder %v4688_v9, 0.0 }
 0x671   : > { %v4716_v62 = vmul.f32 1.442695, %v4703_v44  ;;  %v4705_v29 = vmin.f32 %v4689_v2, 0.0  ;;  %vm4697_vm3 = vcmp.gt.f32.partialorder %v4689_v2, 0.0 }
 0x672   : > { %6512 = vpow2.f32 %v4714_v45  ;;  %v4718_v19 = vmul.f32 1.442695, %v4704_v11 }
 0x673   : > { %6514 = vpow2.f32 %v4716_v62  ;;  %v4720_v41 = vmul.f32 1.442695, %v4705_v29 }
 0x674   : > { %v6505_v54 = vpop.eup %6504  ;;  %6516 = vpow2.f32 %v4718_v19 }
 0x675   : > { %v6507_v43 = vpop.eup %6506  ;;  %v5203_v23 = vadd.f32 -1.0, %v6505_v54  ;;  %6518 = vpow2.f32 %v4720_v41 }
 0x676   : > { %v6509_v46 = vpop.eup %6508  ;;  %v5204_v3 = vadd.f32 -1.0, %v6507_v43 }
 0x677   : > { %v6511_v30 = vpop.eup %6510  ;;  %v4730_v57 = vsel %vm4690_vm2, %v4682_v20, %v5203_v23  ;;  %v5205_v10 = vadd.f32 -1.0, %v6509_v46 }
 0x678   : > { %4738 = vst [vmem:[%s8386_s6] sm:$0xff] %v4730_v57  ;;  %v4731_v31 = vsel %vm4691_vm4, %v4683_v24, %v5204_v3  ;;  %v5206_v15 = vadd.f32 -1.0, %v6511_v30 }
 0x679   : > { %4739 = vst [vmem:[%s8386_s6 + $0x8] sm:$0xff] %v4731_v31  ;;  %v4732_v13 = vsel %vm4692_vm5, %v4684_v58, %v5205_v10 }
 0x67a   : > { %4740 = vst [vmem:[%s8386_s6 + $0x10] sm:$0xff] %v4732_v13  ;;  %v4733_v17 = vsel %vm4693_vm10, %v4685_v35, %v5206_v15 }
 0x67b   : > { %4741 = vst [vmem:[%s8386_s6 + $0x18] sm:$0xff] %v4733_v17 }
 0x67c   : > { %v6513_v33 = vpop.eup %6512 }
 0x67d   : > { %v6515_v48 = vpop.eup %6514  ;;  %v5207_v53 = vadd.f32 -1.0, %v6513_v33 }
 0x67e   : > { %v6517_v18 = vpop.eup %6516  ;;  %v5208_v50 = vadd.f32 -1.0, %v6515_v48 }
 0x67f   : > { %v6519_v47 = vpop.eup %6518  ;;  %v4734_v63 = vsel %vm4694_vm15, %v4686_v0, %v5207_v53  ;;  %v5209_v25 = vadd.f32 -1.0, %v6517_v18 }
 0x680   : > { %4742 = vst [vmem:[%s8386_s6 + $0x20] sm:$0xff] %v4734_v63  ;;  %v4735_v21 = vsel %vm4695_vm0, %v4687_v28, %v5208_v50  ;;  %v5210_v12 = vadd.f32 -1.0, %v6519_v47 }
 0x681   : > { %4743 = vst [vmem:[%s8386_s6 + $0x28] sm:$0xff] %v4735_v21  ;;  %v4736_v61 = vsel %vm4696_vm1, %v4688_v9, %v5209_v25 }
 0x682   : > { %4744 = vst [vmem:[%s8386_s6 + $0x30] sm:$0xff] %v4736_v61  ;;  %v4737_v36 = vsel %vm4697_vm3, %v4689_v2, %v5210_v12 }
 0x683   : > { %4745 = vst [vmem:[%s8386_s6 + $0x38] sm:$0xff] %v4737_v36 }
 0x684 PF: > { %s15_s18 = sadd.s32 1, %s6526_s18  }
 0x685   : > { %p12_p4 = scmp.ge.s32.totalorder %s15_s18, 4  }
 0x687   :  { %14 = sbr.rel (!%p12_p4) target bundleno = 1 (0x1), region = 86 }

</bundles_post_ra>
